<compile_context>
chip_gen: v7x
topology: tpu7x:2x2x1
jax: 0.10.0
libtpu: 0.0.40
codegen_flags: <defaults>
</compile_context>

<pallas_src>
import functools

import jax
import jax.numpy as jnp
from jax import lax
from jax.experimental import pallas as pl
from jax.experimental.pallas import tpu as pltpu


# ---------------------------------------------------------------------------
# helpers
# ---------------------------------------------------------------------------
def _full_spec(shape):
    nd = len(shape)
    return pl.BlockSpec(shape, lambda i, _n=nd: (0,) * _n)


# ---------------------------------------------------------------------------
# fused forward kernel
# ---------------------------------------------------------------------------
def fused_forward_kernel(
    nfeat_ref, efeat_ref, radd_ref, S_ref, Dm_ref, Mn_ref, Me_ref,
    wcat1_ref, bcat1_ref, wfij1_ref, bfij1_ref, wattn1_ref,
    wcat2_ref, bcat2_ref, wfij2_ref, bfij2_ref, wattn2_ref,
    waggN_ref, baggN_ref, waggE_ref, baggE_ref,
    w1gN_ref, w1gE_ref, w1r_ref, b1_ref,
    w2_ref, b2_ref, w3_ref, b3_ref,
    out_ref, *, num_repeats):
    f32, bf16 = jnp.float32, jnp.bfloat16
    HD = wfij1_ref.shape[1]

    # bf16 one-hot incidence (halved HBM bytes) cast once; graph gathers/scatters
    # stay exact in f32.
    Sf = S_ref[...].astype(f32)      # (E, N) src one-hot
    Dmf = Dm_ref[...].astype(f32)    # (E, N) dst one-hot

    def scatter_dst(x):              # DmT @ x without materializing DmT
        return lax.dot_general(Dmf, x, (((0,), (0,)), ((), ())),
                               preferred_element_type=f32)

    def egat(nf, ef, wcat_ref, bcat_ref, wfij_ref, bfij_ref, wattn_ref):
        # merged node projections, column order [f_ni | fc_node | f_nj]
        proj = jnp.dot(nf.astype(bf16), wcat_ref[...],
                       preferred_element_type=f32) + bcat_ref[...]      # (N, 3*HD)
        f_fij = jnp.dot(ef.astype(bf16), wfij_ref[...],
                        preferred_element_type=f32) + bfij_ref[...]     # (E, HD)
        # fused source gather of [f_ni | fc_node(h)] in one matmul
        src_g = jnp.dot(Sf, proj[:, :2 * HD], preferred_element_type=f32)
        f_src, h_src = src_g[:, :HD], src_g[:, HD:]
        f_dst = jnp.dot(Dmf, proj[:, 2 * HD:], preferred_element_type=f32)
        f_out = f_src + f_fij + f_dst                                   # new edge feats
        e = jnp.maximum(f_out, 0.2 * f_out)                             # leaky_relu(0.2)
        # block-broadcast attention weight -> per-head score already replicated
        # across the Dh lanes of its head (no expand matmul needed).
        a = jnp.dot(e.astype(bf16), wattn_ref[...], preferred_element_type=f32)
        a = a - jnp.max(a, axis=0, keepdims=True)                       # per-head max
        ea = jnp.exp(a)
        # edge-softmax over edges sharing a destination node
        denom_e = jnp.dot(Dmf, scatter_dst(ea), preferred_element_type=f32)
        alpha = ea * pl.reciprocal(denom_e, approx=True)
        node_out = scatter_dst(alpha * h_src)                           # (N, HD)
        return node_out, f_out

    nfe, efe = egat(nfeat_ref[...], efeat_ref[...],
                    wcat1_ref, bcat1_ref, wfij1_ref, bfij1_ref, wattn1_ref)
    for _ in range(num_repeats):                                        # unrolled
        nfe, efe = egat(nfe, efe,
                        wcat2_ref, bcat2_ref, wfij2_ref, bfij2_ref, wattn2_ref)

    # agg_N_feats / agg_E_feats + per-graph sum pooling
    aggN = jnp.dot(nfe.astype(bf16), waggN_ref[...],
                   preferred_element_type=f32) + baggN_ref[...]         # (N, A)
    aggE = jnp.dot(efe.astype(bf16), waggE_ref[...],
                   preferred_element_type=f32) + baggE_ref[...]         # (E, A)
    gN = jnp.dot(Mn_ref[...].astype(f32), aggN, preferred_element_type=f32)  # (B, A)
    gE = jnp.dot(Me_ref[...].astype(f32), aggE, preferred_element_type=f32)  # (B, A)

    # mlp head: concat([gN, gE, Radd]) @ W1 expressed as split matmuls (no concat)
    x = (jnp.dot(gN.astype(bf16), w1gN_ref[...], preferred_element_type=f32)
         + jnp.dot(gE.astype(bf16), w1gE_ref[...], preferred_element_type=f32)
         + jnp.dot(radd_ref[...].astype(bf16), w1r_ref[...], preferred_element_type=f32)
         + b1_ref[...])
    x = jnp.maximum(x, 0.0)
    x = jnp.dot(x.astype(bf16), w2_ref[...], preferred_element_type=f32) + b2_ref[...]
    x = jnp.maximum(x, 0.0)
    out_ref[...] = jnp.dot(x.astype(bf16), w3_ref[...],
                           preferred_element_type=f32) + b3_ref[...]


# ---------------------------------------------------------------------------
# full forward (Embed == 0, no attention maps) -> ONE pallas_call
# ---------------------------------------------------------------------------
def molecular_ablation_forward(nfeat, efeat, Radd, graph, params, egat_layers=3):
    S, Dm, Mn, Me = graph
    B = Mn.shape[0]
    Mo = params["mlp"]["w3"].shape[1]
    p1, p2 = params["egat1"], params["egat2"]
    pa, pm = params["agg"], params["mlp"]
    ins = (nfeat, efeat, Radd, S, Dm, Mn, Me,
           p1["w_cat"], p1["b_cat"], p1["w_fij"], p1["b_fij"], p1["w_attn"],
           p2["w_cat"], p2["b_cat"], p2["w_fij"], p2["b_fij"], p2["w_attn"],
           pa["w_aggN"], pa["b_aggN"], pa["w_aggE"], pa["b_aggE"],
           pm["w1gN"], pm["w1gE"], pm["w1r"], pm["b1"],
           pm["w2"], pm["b2"], pm["w3"], pm["b3"])
    kernel = functools.partial(fused_forward_kernel, num_repeats=egat_layers - 1)
    return pl.pallas_call(
        kernel,
        grid=(1,),
        in_specs=[_full_spec(x.shape) for x in ins],
        out_specs=_full_spec((B, Mo)),
        out_shape=jax.ShapeDtypeStruct((B, Mo), jnp.float32),
        compiler_params=pltpu.CompilerParams(
            dimension_semantics=("arbitrary",),
            vmem_limit_bytes=32 * 1024 * 1024),
    )(*ins)


# ---------------------------------------------------------------------------
# deterministic parameter / graph construction
# ---------------------------------------------------------------------------
def init_params(key, Fn, Fe, H, Dh, agg_dim, radd_dim, m1, m2, m_out):
    HD = H * Dh
    keys = iter(jax.random.split(key, 64))

    def lin(fan_in, fan_out, scale=0.1):
        w = jax.random.normal(next(keys), (fan_in, fan_out), jnp.float32) * scale
        return w.astype(jnp.bfloat16)

    def bias(fan_out):
        return jax.random.normal(next(keys), (1, fan_out), jnp.float32) * 0.01

    def egat(fin_n, fin_e):
        w_ni, w_nj, w_node = lin(fin_n, HD), lin(fin_n, HD), lin(fin_n, HD)
        b_ni, b_nj, b_node = bias(HD), bias(HD), bias(HD)
        # merged column order [ni | node | nj]: the first 2*HD cols feed the src gather
        w_cat = jnp.concatenate([w_ni, w_node, w_nj], axis=1)
        b_cat = jnp.concatenate([b_ni, b_node, b_nj], axis=1)
        attn = jax.random.normal(next(keys), (H, Dh), jnp.float32) * 0.1
        rows = jnp.arange(HD)
        same_head = (rows[:, None] // Dh) == (rows[None, :] // Dh)      # (HD, HD)
        # block-broadcast attention: row h*Dh+d carries attn[h, d] across all
        # columns of head h -> (e @ w_attn)[:, c] == per-head score of head(c).
        w_attn = jnp.where(same_head, attn.reshape(HD)[:, None],
                           0.0).astype(jnp.bfloat16)
        return dict(w_cat=w_cat, b_cat=b_cat,
                    w_fij=lin(fin_e, HD), b_fij=bias(HD), w_attn=w_attn)

    return dict(
        egat1=egat(Fn, Fe),
        egat2=egat(HD, HD),
        agg=dict(w_aggN=lin(HD, agg_dim), b_aggN=bias(agg_dim),
                 w_aggE=lin(HD, agg_dim), b_aggE=bias(agg_dim)),
        mlp=dict(w1gN=lin(agg_dim, m1), w1gE=lin(agg_dim, m1),
                 w1r=lin(radd_dim, m1), b1=bias(m1),
                 w2=lin(m1, m2), b2=bias(m2),
                 w3=lin(m2, m_out), b3=bias(m_out)),
    )


def build_graph(num_graphs, nodes_per_graph):
    """Batched bidirectional ring graphs -> dense bf16 incidence matrices."""
    src, dst = [], []
    node_gid, edge_gid = [], []
    for g in range(num_graphs):
        off = g * nodes_per_graph
        node_gid += [g] * nodes_per_graph
        for i in range(nodes_per_graph):
            s, d = off + i, off + (i + 1) % nodes_per_graph
            src += [s, d]
            dst += [d, s]
            edge_gid += [g, g]
    N = num_graphs * nodes_per_graph
    E = len(src)
    src = jnp.array(src, jnp.int32)
    dst = jnp.array(dst, jnp.int32)
    node_gid = jnp.array(node_gid, jnp.int32)
    edge_gid = jnp.array(edge_gid, jnp.int32)
    nrange = jnp.arange(N, dtype=jnp.int32)
    grange = jnp.arange(num_graphs, dtype=jnp.int32)
    S = (src[:, None] == nrange[None, :]).astype(jnp.bfloat16)        # (E, N)
    Dm = (dst[:, None] == nrange[None, :]).astype(jnp.bfloat16)       # (E, N)
    Mn = (grange[:, None] == node_gid[None, :]).astype(jnp.bfloat16)  # (B, N)
    Me = (grange[:, None] == edge_gid[None, :]).astype(jnp.bfloat16)  # (B, E)
    return S, Dm, Mn, Me, N, E


# ---------------------------------------------------------------------------
if __name__ == "__main__":
    # config (defaults of the ablation cfg: no feature removals)
    NUM_GRAPHS = 2
    NODES_PER_GRAPH = 8
    FN = 17          # num_node_feats
    FE = 15          # num_edge_feats
    HIDDEN = 32      # cfg.hidden_dim
    HEADS = 4        # cfg.num_heads
    EGAT_LAYERS = 3  # cfg.EGAT_layers
    AGG_DIM = 64     # agg_N_feats / agg_E_feats output width
    RADD_DIM = 8     # add-on feature width
    M1, M2, M_OUT = 64, 32, 1

    S, Dm, Mn, Me, N, E = build_graph(NUM_GRAPHS, NODES_PER_GRAPH)

    key = jax.random.PRNGKey(0)
    k_n, k_e, k_r, k_p = jax.random.split(key, 4)
    node_feats = jax.random.normal(k_n, (N, FN), jnp.float32)
    edge_feats = jax.random.normal(k_e, (E, FE), jnp.float32)
    Radd = jax.random.normal(k_r, (NUM_GRAPHS, RADD_DIM), jnp.float32)

    params = init_params(k_p, FN, FE, HEADS, HIDDEN, AGG_DIM, RADD_DIM, M1, M2, M_OUT)

    out = molecular_ablation_forward(
        node_feats, edge_feats, Radd, (S, Dm, Mn, Me), params,
        egat_layers=EGAT_LAYERS)
    out = jax.block_until_ready(out)

    assert out.shape == (NUM_GRAPHS, M_OUT)
    assert bool(jnp.all(jnp.isfinite(out)))
    print("KERNEL_OK")
</pallas_src>

<mosaic_0001>
module attributes {stable_mosaic.version = 11 : i64} {
  func.func @fused_forward_kernel(%arg0: i32, %arg1: memref<16x17xf32, #tpu.memory_space<vmem>>, %arg2: memref<32x15xf32, #tpu.memory_space<vmem>>, %arg3: memref<2x8xf32, #tpu.memory_space<vmem>>, %arg4: memref<32x16xbf16, #tpu.memory_space<vmem>>, %arg5: memref<32x16xbf16, #tpu.memory_space<vmem>>, %arg6: memref<2x16xbf16, #tpu.memory_space<vmem>>, %arg7: memref<2x32xbf16, #tpu.memory_space<vmem>>, %arg8: memref<17x384xbf16, #tpu.memory_space<vmem>>, %arg9: memref<1x384xf32, #tpu.memory_space<vmem>>, %arg10: memref<15x128xbf16, #tpu.memory_space<vmem>>, %arg11: memref<1x128xf32, #tpu.memory_space<vmem>>, %arg12: memref<128x128xbf16, #tpu.memory_space<vmem>>, %arg13: memref<128x384xbf16, #tpu.memory_space<vmem>>, %arg14: memref<1x384xf32, #tpu.memory_space<vmem>>, %arg15: memref<128x128xbf16, #tpu.memory_space<vmem>>, %arg16: memref<1x128xf32, #tpu.memory_space<vmem>>, %arg17: memref<128x128xbf16, #tpu.memory_space<vmem>>, %arg18: memref<128x64xbf16, #tpu.memory_space<vmem>>, %arg19: memref<1x64xf32, #tpu.memory_space<vmem>>, %arg20: memref<128x64xbf16, #tpu.memory_space<vmem>>, %arg21: memref<1x64xf32, #tpu.memory_space<vmem>>, %arg22: memref<64x64xbf16, #tpu.memory_space<vmem>>, %arg23: memref<64x64xbf16, #tpu.memory_space<vmem>>, %arg24: memref<8x64xbf16, #tpu.memory_space<vmem>>, %arg25: memref<1x64xf32, #tpu.memory_space<vmem>>, %arg26: memref<64x32xbf16, #tpu.memory_space<vmem>>, %arg27: memref<1x32xf32, #tpu.memory_space<vmem>>, %arg28: memref<32x1xbf16, #tpu.memory_space<vmem>>, %arg29: memref<1x1xf32, #tpu.memory_space<vmem>>, %arg30: memref<2x1xf32, #tpu.memory_space<vmem>>) attributes {dimension_semantics = [#tpu.dimension_semantics<arbitrary>], iteration_bounds = array<i64: 1>, scalar_prefetch = 0 : i64, scratch_operands = 0 : i64, tpu.core_type = #tpu.core_type<tc>, window_params = [{pipeline_mode = #tpu.pipeline_mode<synchronous>, transform_indices = @transform_0, window_bounds = array<i64: 16, 17>}, {pipeline_mode = #tpu.pipeline_mode<synchronous>, transform_indices = @transform_1, window_bounds = array<i64: 32, 15>}, {pipeline_mode = #tpu.pipeline_mode<synchronous>, transform_indices = @transform_2, window_bounds = array<i64: 2, 8>}, {pipeline_mode = #tpu.pipeline_mode<synchronous>, transform_indices = @transform_3, window_bounds = array<i64: 32, 16>}, {pipeline_mode = #tpu.pipeline_mode<synchronous>, transform_indices = @transform_4, window_bounds = array<i64: 32, 16>}, {pipeline_mode = #tpu.pipeline_mode<synchronous>, transform_indices = @transform_5, window_bounds = array<i64: 2, 16>}, {pipeline_mode = #tpu.pipeline_mode<synchronous>, transform_indices = @transform_6, window_bounds = array<i64: 2, 32>}, {pipeline_mode = #tpu.pipeline_mode<synchronous>, transform_indices = @transform_7, window_bounds = array<i64: 17, 384>}, {pipeline_mode = #tpu.pipeline_mode<synchronous>, transform_indices = @transform_8, window_bounds = array<i64: 1, 384>}, {pipeline_mode = #tpu.pipeline_mode<synchronous>, transform_indices = @transform_9, window_bounds = array<i64: 15, 128>}, {pipeline_mode = #tpu.pipeline_mode<synchronous>, transform_indices = @transform_10, window_bounds = array<i64: 1, 128>}, {pipeline_mode = #tpu.pipeline_mode<synchronous>, transform_indices = @transform_11, window_bounds = array<i64: 128, 128>}, {pipeline_mode = #tpu.pipeline_mode<synchronous>, transform_indices = @transform_12, window_bounds = array<i64: 128, 384>}, {pipeline_mode = #tpu.pipeline_mode<synchronous>, transform_indices = @transform_13, window_bounds = array<i64: 1, 384>}, {pipeline_mode = #tpu.pipeline_mode<synchronous>, transform_indices = @transform_14, window_bounds = array<i64: 128, 128>}, {pipeline_mode = #tpu.pipeline_mode<synchronous>, transform_indices = @transform_15, window_bounds = array<i64: 1, 128>}, {pipeline_mode = #tpu.pipeline_mode<synchronous>, transform_indices = @transform_16, window_bounds = array<i64: 128, 128>}, {pipeline_mode = #tpu.pipeline_mode<synchronous>, transform_indices = @transform_17, window_bounds = array<i64: 128, 64>}, {pipeline_mode = #tpu.pipeline_mode<synchronous>, transform_indices = @transform_18, window_bounds = array<i64: 1, 64>}, {pipeline_mode = #tpu.pipeline_mode<synchronous>, transform_indices = @transform_19, window_bounds = array<i64: 128, 64>}, {pipeline_mode = #tpu.pipeline_mode<synchronous>, transform_indices = @transform_20, window_bounds = array<i64: 1, 64>}, {pipeline_mode = #tpu.pipeline_mode<synchronous>, transform_indices = @transform_21, window_bounds = array<i64: 64, 64>}, {pipeline_mode = #tpu.pipeline_mode<synchronous>, transform_indices = @transform_22, window_bounds = array<i64: 64, 64>}, {pipeline_mode = #tpu.pipeline_mode<synchronous>, transform_indices = @transform_23, window_bounds = array<i64: 8, 64>}, {pipeline_mode = #tpu.pipeline_mode<synchronous>, transform_indices = @transform_24, window_bounds = array<i64: 1, 64>}, {pipeline_mode = #tpu.pipeline_mode<synchronous>, transform_indices = @transform_25, window_bounds = array<i64: 64, 32>}, {pipeline_mode = #tpu.pipeline_mode<synchronous>, transform_indices = @transform_26, window_bounds = array<i64: 1, 32>}, {pipeline_mode = #tpu.pipeline_mode<synchronous>, transform_indices = @transform_27, window_bounds = array<i64: 32, 1>}, {pipeline_mode = #tpu.pipeline_mode<synchronous>, transform_indices = @transform_28, window_bounds = array<i64: 1, 1>}, {pipeline_mode = #tpu.pipeline_mode<synchronous>, transform_indices = @transform_29, window_bounds = array<i64: 2, 1>}]} {
    %c0 = arith.constant 0 : index
    %c0_0 = arith.constant 0 : index
    %0 = vector.load %arg4[%c0, %c0_0] : memref<32x16xbf16, #tpu.memory_space<vmem>>, vector<32x16xbf16>
    %1 = arith.extf %0 : vector<32x16xbf16> to vector<32x16xf32>
    %c0_1 = arith.constant 0 : index
    %c0_2 = arith.constant 0 : index
    %2 = vector.load %arg5[%c0_1, %c0_2] : memref<32x16xbf16, #tpu.memory_space<vmem>>, vector<32x16xbf16>
    %3 = arith.extf %2 : vector<32x16xbf16> to vector<32x16xf32>
    %c0_3 = arith.constant 0 : index
    %c0_4 = arith.constant 0 : index
    %4 = vector.load %arg1[%c0_3, %c0_4] : memref<16x17xf32, #tpu.memory_space<vmem>>, vector<16x17xf32>
    %c0_5 = arith.constant 0 : index
    %c0_6 = arith.constant 0 : index
    %5 = vector.load %arg2[%c0_5, %c0_6] : memref<32x15xf32, #tpu.memory_space<vmem>>, vector<32x15xf32>
    %6 = arith.truncf %4 : vector<16x17xf32> to vector<16x17xbf16>
    %c0_7 = arith.constant 0 : index
    %c0_8 = arith.constant 0 : index
    %7 = vector.load %arg8[%c0_7, %c0_8] : memref<17x384xbf16, #tpu.memory_space<vmem>>, vector<17x384xbf16>
    %cst = arith.constant dense<0.000000e+00> : vector<16x384xf32>
    %8 = tpu.matmul %6, %7, %cst {dimension_numbers = #tpu.dot_dimension_numbers<[1], [0], [0], [1], [0, 0, 1, 1], [], []>} : vector<16x17xbf16>, vector<17x384xbf16>, vector<16x384xf32> -> vector<16x384xf32>
    %c0_9 = arith.constant 0 : index
    %c0_10 = arith.constant 0 : index
    %9 = vector.load %arg9[%c0_9, %c0_10] : memref<1x384xf32, #tpu.memory_space<vmem>>, vector<1x384xf32>
    %10 = vector.broadcast %9 : vector<1x384xf32> to vector<16x384xf32>
    %11 = arith.addf %8, %10 : vector<16x384xf32>
    %12 = arith.truncf %5 : vector<32x15xf32> to vector<32x15xbf16>
    %c0_11 = arith.constant 0 : index
    %c0_12 = arith.constant 0 : index
    %13 = vector.load %arg10[%c0_11, %c0_12] : memref<15x128xbf16, #tpu.memory_space<vmem>>, vector<15x128xbf16>
    %cst_13 = arith.constant dense<0.000000e+00> : vector<32x128xf32>
    %14 = tpu.matmul %12, %13, %cst_13 {dimension_numbers = #tpu.dot_dimension_numbers<[1], [0], [0], [1], [0, 0, 1, 1], [], []>} : vector<32x15xbf16>, vector<15x128xbf16>, vector<32x128xf32> -> vector<32x128xf32>
    %c0_14 = arith.constant 0 : index
    %c0_15 = arith.constant 0 : index
    %15 = vector.load %arg11[%c0_14, %c0_15] : memref<1x128xf32, #tpu.memory_space<vmem>>, vector<1x128xf32>
    %16 = vector.broadcast %15 : vector<1x128xf32> to vector<32x128xf32>
    %17 = arith.addf %14, %16 : vector<32x128xf32>
    %18 = vector.extract_strided_slice %11 {offsets = [0, 0], sizes = [16, 256], strides = [1, 1]} : vector<16x384xf32> to vector<16x256xf32>
    %cst_16 = arith.constant dense<0.000000e+00> : vector<32x256xf32>
    %19 = tpu.matmul %1, %18, %cst_16 {dimension_numbers = #tpu.dot_dimension_numbers<[1], [0], [0], [1], [0, 0, 1, 1], [], []>} : vector<32x16xf32>, vector<16x256xf32>, vector<32x256xf32> -> vector<32x256xf32>
    %20 = vector.extract_strided_slice %19 {offsets = [0, 0], sizes = [32, 128], strides = [1, 1]} : vector<32x256xf32> to vector<32x128xf32>
    %21 = vector.extract_strided_slice %19 {offsets = [0, 128], sizes = [32, 128], strides = [1, 1]} : vector<32x256xf32> to vector<32x128xf32>
    %22 = vector.extract_strided_slice %11 {offsets = [0, 256], sizes = [16, 128], strides = [1, 1]} : vector<16x384xf32> to vector<16x128xf32>
    %cst_17 = arith.constant dense<0.000000e+00> : vector<32x128xf32>
    %23 = tpu.matmul %3, %22, %cst_17 {dimension_numbers = #tpu.dot_dimension_numbers<[1], [0], [0], [1], [0, 0, 1, 1], [], []>} : vector<32x16xf32>, vector<16x128xf32>, vector<32x128xf32> -> vector<32x128xf32>
    %24 = arith.addf %20, %17 : vector<32x128xf32>
    %25 = arith.addf %24, %23 : vector<32x128xf32>
    %cst_18 = arith.constant 2.000000e-01 : f32
    %26 = vector.broadcast %cst_18 : f32 to vector<32x128xf32>
    %27 = arith.mulf %26, %25 : vector<32x128xf32>
    %28 = arith.maximumf %25, %27 : vector<32x128xf32>
    %29 = arith.truncf %28 : vector<32x128xf32> to vector<32x128xbf16>
    %c0_19 = arith.constant 0 : index
    %c0_20 = arith.constant 0 : index
    %30 = vector.load %arg12[%c0_19, %c0_20] : memref<128x128xbf16, #tpu.memory_space<vmem>>, vector<128x128xbf16>
    %cst_21 = arith.constant dense<0.000000e+00> : vector<32x128xf32>
    %31 = tpu.matmul %29, %30, %cst_21 {dimension_numbers = #tpu.dot_dimension_numbers<[1], [0], [0], [1], [0, 0, 1, 1], [], []>} : vector<32x128xbf16>, vector<128x128xbf16>, vector<32x128xf32> -> vector<32x128xf32>
    %cst_22 = arith.constant dense<0xFF800000> : vector<128xf32>
    %32 = vector.multi_reduction <maximumf>, %31, %cst_22 [0] : vector<32x128xf32> to vector<128xf32>
    %33 = vector.shape_cast %32 : vector<128xf32> to vector<1x128xf32>
    %34 = vector.broadcast %33 : vector<1x128xf32> to vector<32x128xf32>
    %35 = arith.subf %31, %34 : vector<32x128xf32>
    %36 = math.exp %35 : vector<32x128xf32>
    %cst_23 = arith.constant dense<0.000000e+00> : vector<16x128xf32>
    %37 = tpu.matmul %3, %36, %cst_23 {dimension_numbers = #tpu.dot_dimension_numbers<[0], [0], [1], [1], [0, 1, 1, 1], [], []>} : vector<32x16xf32>, vector<32x128xf32>, vector<16x128xf32> -> vector<16x128xf32>
    %cst_24 = arith.constant dense<0.000000e+00> : vector<32x128xf32>
    %38 = tpu.matmul %3, %37, %cst_24 {dimension_numbers = #tpu.dot_dimension_numbers<[1], [0], [0], [1], [0, 0, 1, 1], [], []>} : vector<32x16xf32>, vector<16x128xf32>, vector<32x128xf32> -> vector<32x128xf32>
    %39 = tpu.reciprocal %38 {approx = true} : vector<32x128xf32> -> vector<32x128xf32>
    %40 = arith.mulf %36, %39 : vector<32x128xf32>
    %41 = arith.mulf %40, %21 : vector<32x128xf32>
    %cst_25 = arith.constant dense<0.000000e+00> : vector<16x128xf32>
    %42 = tpu.matmul %3, %41, %cst_25 {dimension_numbers = #tpu.dot_dimension_numbers<[0], [0], [1], [1], [0, 1, 1, 1], [], []>} : vector<32x16xf32>, vector<32x128xf32>, vector<16x128xf32> -> vector<16x128xf32>
    %43 = arith.truncf %42 : vector<16x128xf32> to vector<16x128xbf16>
    %c0_26 = arith.constant 0 : index
    %c0_27 = arith.constant 0 : index
    %44 = vector.load %arg13[%c0_26, %c0_27] : memref<128x384xbf16, #tpu.memory_space<vmem>>, vector<128x384xbf16>
    %cst_28 = arith.constant dense<0.000000e+00> : vector<16x384xf32>
    %45 = tpu.matmul %43, %44, %cst_28 {dimension_numbers = #tpu.dot_dimension_numbers<[1], [0], [0], [1], [0, 0, 1, 1], [], []>} : vector<16x128xbf16>, vector<128x384xbf16>, vector<16x384xf32> -> vector<16x384xf32>
    %c0_29 = arith.constant 0 : index
    %c0_30 = arith.constant 0 : index
    %46 = vector.load %arg14[%c0_29, %c0_30] : memref<1x384xf32, #tpu.memory_space<vmem>>, vector<1x384xf32>
    %47 = vector.broadcast %46 : vector<1x384xf32> to vector<16x384xf32>
    %48 = arith.addf %45, %47 : vector<16x384xf32>
    %49 = arith.truncf %25 : vector<32x128xf32> to vector<32x128xbf16>
    %c0_31 = arith.constant 0 : index
    %c0_32 = arith.constant 0 : index
    %50 = vector.load %arg15[%c0_31, %c0_32] : memref<128x128xbf16, #tpu.memory_space<vmem>>, vector<128x128xbf16>
    %cst_33 = arith.constant dense<0.000000e+00> : vector<32x128xf32>
    %51 = tpu.matmul %49, %50, %cst_33 {dimension_numbers = #tpu.dot_dimension_numbers<[1], [0], [0], [1], [0, 0, 1, 1], [], []>} : vector<32x128xbf16>, vector<128x128xbf16>, vector<32x128xf32> -> vector<32x128xf32>
    %c0_34 = arith.constant 0 : index
    %c0_35 = arith.constant 0 : index
    %52 = vector.load %arg16[%c0_34, %c0_35] : memref<1x128xf32, #tpu.memory_space<vmem>>, vector<1x128xf32>
    %53 = vector.broadcast %52 : vector<1x128xf32> to vector<32x128xf32>
    %54 = arith.addf %51, %53 : vector<32x128xf32>
    %55 = vector.extract_strided_slice %48 {offsets = [0, 0], sizes = [16, 256], strides = [1, 1]} : vector<16x384xf32> to vector<16x256xf32>
    %cst_36 = arith.constant dense<0.000000e+00> : vector<32x256xf32>
    %56 = tpu.matmul %1, %55, %cst_36 {dimension_numbers = #tpu.dot_dimension_numbers<[1], [0], [0], [1], [0, 0, 1, 1], [], []>} : vector<32x16xf32>, vector<16x256xf32>, vector<32x256xf32> -> vector<32x256xf32>
    %57 = vector.extract_strided_slice %56 {offsets = [0, 0], sizes = [32, 128], strides = [1, 1]} : vector<32x256xf32> to vector<32x128xf32>
    %58 = vector.extract_strided_slice %56 {offsets = [0, 128], sizes = [32, 128], strides = [1, 1]} : vector<32x256xf32> to vector<32x128xf32>
    %59 = vector.extract_strided_slice %48 {offsets = [0, 256], sizes = [16, 128], strides = [1, 1]} : vector<16x384xf32> to vector<16x128xf32>
    %cst_37 = arith.constant dense<0.000000e+00> : vector<32x128xf32>
    %60 = tpu.matmul %3, %59, %cst_37 {dimension_numbers = #tpu.dot_dimension_numbers<[1], [0], [0], [1], [0, 0, 1, 1], [], []>} : vector<32x16xf32>, vector<16x128xf32>, vector<32x128xf32> -> vector<32x128xf32>
    %61 = arith.addf %57, %54 : vector<32x128xf32>
    %62 = arith.addf %61, %60 : vector<32x128xf32>
    %cst_38 = arith.constant 2.000000e-01 : f32
    %63 = vector.broadcast %cst_38 : f32 to vector<32x128xf32>
    %64 = arith.mulf %63, %62 : vector<32x128xf32>
    %65 = arith.maximumf %62, %64 : vector<32x128xf32>
    %66 = arith.truncf %65 : vector<32x128xf32> to vector<32x128xbf16>
    %c0_39 = arith.constant 0 : index
    %c0_40 = arith.constant 0 : index
    %67 = vector.load %arg17[%c0_39, %c0_40] : memref<128x128xbf16, #tpu.memory_space<vmem>>, vector<128x128xbf16>
    %cst_41 = arith.constant dense<0.000000e+00> : vector<32x128xf32>
    %68 = tpu.matmul %66, %67, %cst_41 {dimension_numbers = #tpu.dot_dimension_numbers<[1], [0], [0], [1], [0, 0, 1, 1], [], []>} : vector<32x128xbf16>, vector<128x128xbf16>, vector<32x128xf32> -> vector<32x128xf32>
    %cst_42 = arith.constant dense<0xFF800000> : vector<128xf32>
    %69 = vector.multi_reduction <maximumf>, %68, %cst_42 [0] : vector<32x128xf32> to vector<128xf32>
    %70 = vector.shape_cast %69 : vector<128xf32> to vector<1x128xf32>
    %71 = vector.broadcast %70 : vector<1x128xf32> to vector<32x128xf32>
    %72 = arith.subf %68, %71 : vector<32x128xf32>
    %73 = math.exp %72 : vector<32x128xf32>
    %cst_43 = arith.constant dense<0.000000e+00> : vector<16x128xf32>
    %74 = tpu.matmul %3, %73, %cst_43 {dimension_numbers = #tpu.dot_dimension_numbers<[0], [0], [1], [1], [0, 1, 1, 1], [], []>} : vector<32x16xf32>, vector<32x128xf32>, vector<16x128xf32> -> vector<16x128xf32>
    %cst_44 = arith.constant dense<0.000000e+00> : vector<32x128xf32>
    %75 = tpu.matmul %3, %74, %cst_44 {dimension_numbers = #tpu.dot_dimension_numbers<[1], [0], [0], [1], [0, 0, 1, 1], [], []>} : vector<32x16xf32>, vector<16x128xf32>, vector<32x128xf32> -> vector<32x128xf32>
    %76 = tpu.reciprocal %75 {approx = true} : vector<32x128xf32> -> vector<32x128xf32>
    %77 = arith.mulf %73, %76 : vector<32x128xf32>
    %78 = arith.mulf %77, %58 : vector<32x128xf32>
    %cst_45 = arith.constant dense<0.000000e+00> : vector<16x128xf32>
    %79 = tpu.matmul %3, %78, %cst_45 {dimension_numbers = #tpu.dot_dimension_numbers<[0], [0], [1], [1], [0, 1, 1, 1], [], []>} : vector<32x16xf32>, vector<32x128xf32>, vector<16x128xf32> -> vector<16x128xf32>
    %80 = arith.truncf %79 : vector<16x128xf32> to vector<16x128xbf16>
    %c0_46 = arith.constant 0 : index
    %c0_47 = arith.constant 0 : index
    %81 = vector.load %arg13[%c0_46, %c0_47] : memref<128x384xbf16, #tpu.memory_space<vmem>>, vector<128x384xbf16>
    %cst_48 = arith.constant dense<0.000000e+00> : vector<16x384xf32>
    %82 = tpu.matmul %80, %81, %cst_48 {dimension_numbers = #tpu.dot_dimension_numbers<[1], [0], [0], [1], [0, 0, 1, 1], [], []>} : vector<16x128xbf16>, vector<128x384xbf16>, vector<16x384xf32> -> vector<16x384xf32>
    %c0_49 = arith.constant 0 : index
    %c0_50 = arith.constant 0 : index
    %83 = vector.load %arg14[%c0_49, %c0_50] : memref<1x384xf32, #tpu.memory_space<vmem>>, vector<1x384xf32>
    %84 = vector.broadcast %83 : vector<1x384xf32> to vector<16x384xf32>
    %85 = arith.addf %82, %84 : vector<16x384xf32>
    %86 = arith.truncf %62 : vector<32x128xf32> to vector<32x128xbf16>
    %c0_51 = arith.constant 0 : index
    %c0_52 = arith.constant 0 : index
    %87 = vector.load %arg15[%c0_51, %c0_52] : memref<128x128xbf16, #tpu.memory_space<vmem>>, vector<128x128xbf16>
    %cst_53 = arith.constant dense<0.000000e+00> : vector<32x128xf32>
    %88 = tpu.matmul %86, %87, %cst_53 {dimension_numbers = #tpu.dot_dimension_numbers<[1], [0], [0], [1], [0, 0, 1, 1], [], []>} : vector<32x128xbf16>, vector<128x128xbf16>, vector<32x128xf32> -> vector<32x128xf32>
    %c0_54 = arith.constant 0 : index
    %c0_55 = arith.constant 0 : index
    %89 = vector.load %arg16[%c0_54, %c0_55] : memref<1x128xf32, #tpu.memory_space<vmem>>, vector<1x128xf32>
    %90 = vector.broadcast %89 : vector<1x128xf32> to vector<32x128xf32>
    %91 = arith.addf %88, %90 : vector<32x128xf32>
    %92 = vector.extract_strided_slice %85 {offsets = [0, 0], sizes = [16, 256], strides = [1, 1]} : vector<16x384xf32> to vector<16x256xf32>
    %cst_56 = arith.constant dense<0.000000e+00> : vector<32x256xf32>
    %93 = tpu.matmul %1, %92, %cst_56 {dimension_numbers = #tpu.dot_dimension_numbers<[1], [0], [0], [1], [0, 0, 1, 1], [], []>} : vector<32x16xf32>, vector<16x256xf32>, vector<32x256xf32> -> vector<32x256xf32>
    %94 = vector.extract_strided_slice %93 {offsets = [0, 0], sizes = [32, 128], strides = [1, 1]} : vector<32x256xf32> to vector<32x128xf32>
    %95 = vector.extract_strided_slice %93 {offsets = [0, 128], sizes = [32, 128], strides = [1, 1]} : vector<32x256xf32> to vector<32x128xf32>
    %96 = vector.extract_strided_slice %85 {offsets = [0, 256], sizes = [16, 128], strides = [1, 1]} : vector<16x384xf32> to vector<16x128xf32>
    %cst_57 = arith.constant dense<0.000000e+00> : vector<32x128xf32>
    %97 = tpu.matmul %3, %96, %cst_57 {dimension_numbers = #tpu.dot_dimension_numbers<[1], [0], [0], [1], [0, 0, 1, 1], [], []>} : vector<32x16xf32>, vector<16x128xf32>, vector<32x128xf32> -> vector<32x128xf32>
    %98 = arith.addf %94, %91 : vector<32x128xf32>
    %99 = arith.addf %98, %97 : vector<32x128xf32>
    %cst_58 = arith.constant 2.000000e-01 : f32
    %100 = vector.broadcast %cst_58 : f32 to vector<32x128xf32>
    %101 = arith.mulf %100, %99 : vector<32x128xf32>
    %102 = arith.maximumf %99, %101 : vector<32x128xf32>
    %103 = arith.truncf %102 : vector<32x128xf32> to vector<32x128xbf16>
    %c0_59 = arith.constant 0 : index
    %c0_60 = arith.constant 0 : index
    %104 = vector.load %arg17[%c0_59, %c0_60] : memref<128x128xbf16, #tpu.memory_space<vmem>>, vector<128x128xbf16>
    %cst_61 = arith.constant dense<0.000000e+00> : vector<32x128xf32>
    %105 = tpu.matmul %103, %104, %cst_61 {dimension_numbers = #tpu.dot_dimension_numbers<[1], [0], [0], [1], [0, 0, 1, 1], [], []>} : vector<32x128xbf16>, vector<128x128xbf16>, vector<32x128xf32> -> vector<32x128xf32>
    %cst_62 = arith.constant dense<0xFF800000> : vector<128xf32>
    %106 = vector.multi_reduction <maximumf>, %105, %cst_62 [0] : vector<32x128xf32> to vector<128xf32>
    %107 = vector.shape_cast %106 : vector<128xf32> to vector<1x128xf32>
    %108 = vector.broadcast %107 : vector<1x128xf32> to vector<32x128xf32>
    %109 = arith.subf %105, %108 : vector<32x128xf32>
    %110 = math.exp %109 : vector<32x128xf32>
    %cst_63 = arith.constant dense<0.000000e+00> : vector<16x128xf32>
    %111 = tpu.matmul %3, %110, %cst_63 {dimension_numbers = #tpu.dot_dimension_numbers<[0], [0], [1], [1], [0, 1, 1, 1], [], []>} : vector<32x16xf32>, vector<32x128xf32>, vector<16x128xf32> -> vector<16x128xf32>
    %cst_64 = arith.constant dense<0.000000e+00> : vector<32x128xf32>
    %112 = tpu.matmul %3, %111, %cst_64 {dimension_numbers = #tpu.dot_dimension_numbers<[1], [0], [0], [1], [0, 0, 1, 1], [], []>} : vector<32x16xf32>, vector<16x128xf32>, vector<32x128xf32> -> vector<32x128xf32>
    %113 = tpu.reciprocal %112 {approx = true} : vector<32x128xf32> -> vector<32x128xf32>
    %114 = arith.mulf %110, %113 : vector<32x128xf32>
    %115 = arith.mulf %114, %95 : vector<32x128xf32>
    %cst_65 = arith.constant dense<0.000000e+00> : vector<16x128xf32>
    %116 = tpu.matmul %3, %115, %cst_65 {dimension_numbers = #tpu.dot_dimension_numbers<[0], [0], [1], [1], [0, 1, 1, 1], [], []>} : vector<32x16xf32>, vector<32x128xf32>, vector<16x128xf32> -> vector<16x128xf32>
    %117 = arith.truncf %116 : vector<16x128xf32> to vector<16x128xbf16>
    %c0_66 = arith.constant 0 : index
    %c0_67 = arith.constant 0 : index
    %118 = vector.load %arg18[%c0_66, %c0_67] : memref<128x64xbf16, #tpu.memory_space<vmem>>, vector<128x64xbf16>
    %cst_68 = arith.constant dense<0.000000e+00> : vector<16x64xf32>
    %119 = tpu.matmul %117, %118, %cst_68 {dimension_numbers = #tpu.dot_dimension_numbers<[1], [0], [0], [1], [0, 0, 1, 1], [], []>} : vector<16x128xbf16>, vector<128x64xbf16>, vector<16x64xf32> -> vector<16x64xf32>
    %c0_69 = arith.constant 0 : index
    %c0_70 = arith.constant 0 : index
    %120 = vector.load %arg19[%c0_69, %c0_70] : memref<1x64xf32, #tpu.memory_space<vmem>>, vector<1x64xf32>
    %121 = vector.broadcast %120 : vector<1x64xf32> to vector<16x64xf32>
    %122 = arith.addf %119, %121 : vector<16x64xf32>
    %123 = arith.truncf %99 : vector<32x128xf32> to vector<32x128xbf16>
    %c0_71 = arith.constant 0 : index
    %c0_72 = arith.constant 0 : index
    %124 = vector.load %arg20[%c0_71, %c0_72] : memref<128x64xbf16, #tpu.memory_space<vmem>>, vector<128x64xbf16>
    %cst_73 = arith.constant dense<0.000000e+00> : vector<32x64xf32>
    %125 = tpu.matmul %123, %124, %cst_73 {dimension_numbers = #tpu.dot_dimension_numbers<[1], [0], [0], [1], [0, 0, 1, 1], [], []>} : vector<32x128xbf16>, vector<128x64xbf16>, vector<32x64xf32> -> vector<32x64xf32>
    %c0_74 = arith.constant 0 : index
    %c0_75 = arith.constant 0 : index
    %126 = vector.load %arg21[%c0_74, %c0_75] : memref<1x64xf32, #tpu.memory_space<vmem>>, vector<1x64xf32>
    %127 = vector.broadcast %126 : vector<1x64xf32> to vector<32x64xf32>
    %128 = arith.addf %125, %127 : vector<32x64xf32>
    %c0_76 = arith.constant 0 : index
    %c0_77 = arith.constant 0 : index
    %129 = vector.load %arg6[%c0_76, %c0_77] : memref<2x16xbf16, #tpu.memory_space<vmem>>, vector<2x16xbf16>
    %130 = arith.extf %129 : vector<2x16xbf16> to vector<2x16xf32>
    %cst_78 = arith.constant dense<0.000000e+00> : vector<2x64xf32>
    %131 = tpu.matmul %130, %122, %cst_78 {dimension_numbers = #tpu.dot_dimension_numbers<[1], [0], [0], [1], [0, 0, 1, 1], [], []>} : vector<2x16xf32>, vector<16x64xf32>, vector<2x64xf32> -> vector<2x64xf32>
    %c0_79 = arith.constant 0 : index
    %c0_80 = arith.constant 0 : index
    %132 = vector.load %arg7[%c0_79, %c0_80] : memref<2x32xbf16, #tpu.memory_space<vmem>>, vector<2x32xbf16>
    %133 = arith.extf %132 : vector<2x32xbf16> to vector<2x32xf32>
    %cst_81 = arith.constant dense<0.000000e+00> : vector<2x64xf32>
    %134 = tpu.matmul %133, %128, %cst_81 {dimension_numbers = #tpu.dot_dimension_numbers<[1], [0], [0], [1], [0, 0, 1, 1], [], []>} : vector<2x32xf32>, vector<32x64xf32>, vector<2x64xf32> -> vector<2x64xf32>
    %135 = arith.truncf %131 : vector<2x64xf32> to vector<2x64xbf16>
    %c0_82 = arith.constant 0 : index
    %c0_83 = arith.constant 0 : index
    %136 = vector.load %arg22[%c0_82, %c0_83] : memref<64x64xbf16, #tpu.memory_space<vmem>>, vector<64x64xbf16>
    %cst_84 = arith.constant dense<0.000000e+00> : vector<2x64xf32>
    %137 = tpu.matmul %135, %136, %cst_84 {dimension_numbers = #tpu.dot_dimension_numbers<[1], [0], [0], [1], [0, 0, 1, 1], [], []>} : vector<2x64xbf16>, vector<64x64xbf16>, vector<2x64xf32> -> vector<2x64xf32>
    %138 = arith.truncf %134 : vector<2x64xf32> to vector<2x64xbf16>
    %c0_85 = arith.constant 0 : index
    %c0_86 = arith.constant 0 : index
    %139 = vector.load %arg23[%c0_85, %c0_86] : memref<64x64xbf16, #tpu.memory_space<vmem>>, vector<64x64xbf16>
    %cst_87 = arith.constant dense<0.000000e+00> : vector<2x64xf32>
    %140 = tpu.matmul %138, %139, %cst_87 {dimension_numbers = #tpu.dot_dimension_numbers<[1], [0], [0], [1], [0, 0, 1, 1], [], []>} : vector<2x64xbf16>, vector<64x64xbf16>, vector<2x64xf32> -> vector<2x64xf32>
    %141 = arith.addf %137, %140 : vector<2x64xf32>
    %c0_88 = arith.constant 0 : index
    %c0_89 = arith.constant 0 : index
    %142 = vector.load %arg3[%c0_88, %c0_89] : memref<2x8xf32, #tpu.memory_space<vmem>>, vector<2x8xf32>
    %143 = arith.truncf %142 : vector<2x8xf32> to vector<2x8xbf16>
    %c0_90 = arith.constant 0 : index
    %c0_91 = arith.constant 0 : index
    %144 = vector.load %arg24[%c0_90, %c0_91] : memref<8x64xbf16, #tpu.memory_space<vmem>>, vector<8x64xbf16>
    %cst_92 = arith.constant dense<0.000000e+00> : vector<2x64xf32>
    %145 = tpu.matmul %143, %144, %cst_92 {dimension_numbers = #tpu.dot_dimension_numbers<[1], [0], [0], [1], [0, 0, 1, 1], [], []>} : vector<2x8xbf16>, vector<8x64xbf16>, vector<2x64xf32> -> vector<2x64xf32>
    %146 = arith.addf %141, %145 : vector<2x64xf32>
    %c0_93 = arith.constant 0 : index
    %c0_94 = arith.constant 0 : index
    %147 = vector.load %arg25[%c0_93, %c0_94] : memref<1x64xf32, #tpu.memory_space<vmem>>, vector<1x64xf32>
    %148 = vector.broadcast %147 : vector<1x64xf32> to vector<2x64xf32>
    %149 = arith.addf %146, %148 : vector<2x64xf32>
    %cst_95 = arith.constant 0.000000e+00 : f32
    %150 = vector.broadcast %cst_95 : f32 to vector<2x64xf32>
    %151 = arith.maximumf %149, %150 : vector<2x64xf32>
    %152 = arith.truncf %151 : vector<2x64xf32> to vector<2x64xbf16>
    %c0_96 = arith.constant 0 : index
    %c0_97 = arith.constant 0 : index
    %153 = vector.load %arg26[%c0_96, %c0_97] : memref<64x32xbf16, #tpu.memory_space<vmem>>, vector<64x32xbf16>
    %cst_98 = arith.constant dense<0.000000e+00> : vector<2x32xf32>
    %154 = tpu.matmul %152, %153, %cst_98 {dimension_numbers = #tpu.dot_dimension_numbers<[1], [0], [0], [1], [0, 0, 1, 1], [], []>} : vector<2x64xbf16>, vector<64x32xbf16>, vector<2x32xf32> -> vector<2x32xf32>
    %c0_99 = arith.constant 0 : index
    %c0_100 = arith.constant 0 : index
    %155 = vector.load %arg27[%c0_99, %c0_100] : memref<1x32xf32, #tpu.memory_space<vmem>>, vector<1x32xf32>
    %156 = vector.broadcast %155 : vector<1x32xf32> to vector<2x32xf32>
    %157 = arith.addf %154, %156 : vector<2x32xf32>
    %cst_101 = arith.constant 0.000000e+00 : f32
    %158 = vector.broadcast %cst_101 : f32 to vector<2x32xf32>
    %159 = arith.maximumf %157, %158 : vector<2x32xf32>
    %160 = arith.truncf %159 : vector<2x32xf32> to vector<2x32xbf16>
    %c0_102 = arith.constant 0 : index
    %c0_103 = arith.constant 0 : index
    %161 = vector.load %arg28[%c0_102, %c0_103] : memref<32x1xbf16, #tpu.memory_space<vmem>>, vector<32x1xbf16>
    %cst_104 = arith.constant dense<0.000000e+00> : vector<2x1xf32>
    %162 = tpu.matmul %160, %161, %cst_104 {dimension_numbers = #tpu.dot_dimension_numbers<[1], [0], [0], [1], [0, 0, 1, 1], [], []>} : vector<2x32xbf16>, vector<32x1xbf16>, vector<2x1xf32> -> vector<2x1xf32>
    %c0_105 = arith.constant 0 : index
    %c0_106 = arith.constant 0 : index
    %163 = vector.load %arg29[%c0_105, %c0_106] : memref<1x1xf32, #tpu.memory_space<vmem>>, vector<1x1xf32>
    %164 = vector.broadcast %163 : vector<1x1xf32> to vector<2x1xf32>
    %165 = arith.addf %162, %164 : vector<2x1xf32>
    %c0_107 = arith.constant 0 : index
    %c0_108 = arith.constant 0 : index
    %166 = vector.load %arg30[%c0_107, %c0_108] : memref<2x1xf32, #tpu.memory_space<vmem>>, vector<2x1xf32>
    tpu.vector_store %arg30[%c0_107, %c0_108], %165 {strides = array<i32>} : memref<2x1xf32, #tpu.memory_space<vmem>>, vector<2x1xf32>,
    return
  }
  func.func @transform_0(%arg0: i32) -> (i32, i32) {
    %c0_i32 = arith.constant 0 : i32
    %c0_i32_0 = arith.constant 0 : i32
    %c0_i32_1 = arith.constant 0 : i32
    return %c0_i32, %c0_i32_0 : i32, i32
  }
  func.func @transform_1(%arg0: i32) -> (i32, i32) {
    %c0_i32 = arith.constant 0 : i32
    %c0_i32_0 = arith.constant 0 : i32
    %c0_i32_1 = arith.constant 0 : i32
    return %c0_i32, %c0_i32_0 : i32, i32
  }
  func.func @transform_2(%arg0: i32) -> (i32, i32) {
    %c0_i32 = arith.constant 0 : i32
    %c0_i32_0 = arith.constant 0 : i32
    %c0_i32_1 = arith.constant 0 : i32
    return %c0_i32, %c0_i32_0 : i32, i32
  }
  func.func @transform_3(%arg0: i32) -> (i32, i32) {
    %c0_i32 = arith.constant 0 : i32
    %c0_i32_0 = arith.constant 0 : i32
    %c0_i32_1 = arith.constant 0 : i32
    return %c0_i32, %c0_i32_0 : i32, i32
  }
  func.func @transform_4(%arg0: i32) -> (i32, i32) {
    %c0_i32 = arith.constant 0 : i32
    %c0_i32_0 = arith.constant 0 : i32
    %c0_i32_1 = arith.constant 0 : i32
    return %c0_i32, %c0_i32_0 : i32, i32
  }
  func.func @transform_5(%arg0: i32) -> (i32, i32) {
    %c0_i32 = arith.constant 0 : i32
    %c0_i32_0 = arith.constant 0 : i32
    %c0_i32_1 = arith.constant 0 : i32
    return %c0_i32, %c0_i32_0 : i32, i32
  }
  func.func @transform_6(%arg0: i32) -> (i32, i32) {
    %c0_i32 = arith.constant 0 : i32
    %c0_i32_0 = arith.constant 0 : i32
    %c0_i32_1 = arith.constant 0 : i32
    return %c0_i32, %c0_i32_0 : i32, i32
  }
  func.func @transform_7(%arg0: i32) -> (i32, i32) {
    %c0_i32 = arith.constant 0 : i32
    %c0_i32_0 = arith.constant 0 : i32
    %c0_i32_1 = arith.constant 0 : i32
    return %c0_i32, %c0_i32_0 : i32, i32
  }
  func.func @transform_8(%arg0: i32) -> (i32, i32) {
    %c0_i32 = arith.constant 0 : i32
    %c0_i32_0 = arith.constant 0 : i32
    %c0_i32_1 = arith.constant 0 : i32
    return %c0_i32, %c0_i32_0 : i32, i32
  }
  func.func @transform_9(%arg0: i32) -> (i32, i32) {
    %c0_i32 = arith.constant 0 : i32
    %c0_i32_0 = arith.constant 0 : i32
    %c0_i32_1 = arith.constant 0 : i32
    return %c0_i32, %c0_i32_0 : i32, i32
  }
  func.func @transform_10(%arg0: i32) -> (i32, i32) {
    %c0_i32 = arith.constant 0 : i32
    %c0_i32_0 = arith.constant 0 : i32
    %c0_i32_1 = arith.constant 0 : i32
    return %c0_i32, %c0_i32_0 : i32, i32
  }
  func.func @transform_11(%arg0: i32) -> (i32, i32) {
    %c0_i32 = arith.constant 0 : i32
    %c0_i32_0 = arith.constant 0 : i32
    %c0_i32_1 = arith.constant 0 : i32
    return %c0_i32, %c0_i32_0 : i32, i32
  }
  func.func @transform_12(%arg0: i32) -> (i32, i32) {
    %c0_i32 = arith.constant 0 : i32
    %c0_i32_0 = arith.constant 0 : i32
    %c0_i32_1 = arith.constant 0 : i32
    return %c0_i32, %c0_i32_0 : i32, i32
  }
  func.func @transform_13(%arg0: i32) -> (i32, i32) {
    %c0_i32 = arith.constant 0 : i32
    %c0_i32_0 = arith.constant 0 : i32
    %c0_i32_1 = arith.constant 0 : i32
    return %c0_i32, %c0_i32_0 : i32, i32
  }
  func.func @transform_14(%arg0: i32) -> (i32, i32) {
    %c0_i32 = arith.constant 0 : i32
    %c0_i32_0 = arith.constant 0 : i32
    %c0_i32_1 = arith.constant 0 : i32
    return %c0_i32, %c0_i32_0 : i32, i32
  }
  func.func @transform_15(%arg0: i32) -> (i32, i32) {
    %c0_i32 = arith.constant 0 : i32
    %c0_i32_0 = arith.constant 0 : i32
    %c0_i32_1 = arith.constant 0 : i32
    return %c0_i32, %c0_i32_0 : i32, i32
  }
  func.func @transform_16(%arg0: i32) -> (i32, i32) {
    %c0_i32 = arith.constant 0 : i32
    %c0_i32_0 = arith.constant 0 : i32
    %c0_i32_1 = arith.constant 0 : i32
    return %c0_i32, %c0_i32_0 : i32, i32
  }
  func.func @transform_17(%arg0: i32) -> (i32, i32) {
    %c0_i32 = arith.constant 0 : i32
    %c0_i32_0 = arith.constant 0 : i32
    %c0_i32_1 = arith.constant 0 : i32
    return %c0_i32, %c0_i32_0 : i32, i32
  }
  func.func @transform_18(%arg0: i32) -> (i32, i32) {
    %c0_i32 = arith.constant 0 : i32
    %c0_i32_0 = arith.constant 0 : i32
    %c0_i32_1 = arith.constant 0 : i32
    return %c0_i32, %c0_i32_0 : i32, i32
  }
  func.func @transform_19(%arg0: i32) -> (i32, i32) {
    %c0_i32 = arith.constant 0 : i32
    %c0_i32_0 = arith.constant 0 : i32
    %c0_i32_1 = arith.constant 0 : i32
    return %c0_i32, %c0_i32_0 : i32, i32
  }
  func.func @transform_20(%arg0: i32) -> (i32, i32) {
    %c0_i32 = arith.constant 0 : i32
    %c0_i32_0 = arith.constant 0 : i32
    %c0_i32_1 = arith.constant 0 : i32
    return %c0_i32, %c0_i32_0 : i32, i32
  }
  func.func @transform_21(%arg0: i32) -> (i32, i32) {
    %c0_i32 = arith.constant 0 : i32
    %c0_i32_0 = arith.constant 0 : i32
    %c0_i32_1 = arith.constant 0 : i32
    return %c0_i32, %c0_i32_0 : i32, i32
  }
  func.func @transform_22(%arg0: i32) -> (i32, i32) {
    %c0_i32 = arith.constant 0 : i32
    %c0_i32_0 = arith.constant 0 : i32
    %c0_i32_1 = arith.constant 0 : i32
    return %c0_i32, %c0_i32_0 : i32, i32
  }
  func.func @transform_23(%arg0: i32) -> (i32, i32) {
    %c0_i32 = arith.constant 0 : i32
    %c0_i32_0 = arith.constant 0 : i32
    %c0_i32_1 = arith.constant 0 : i32
    return %c0_i32, %c0_i32_0 : i32, i32
  }
  func.func @transform_24(%arg0: i32) -> (i32, i32) {
    %c0_i32 = arith.constant 0 : i32
    %c0_i32_0 = arith.constant 0 : i32
    %c0_i32_1 = arith.constant 0 : i32
    return %c0_i32, %c0_i32_0 : i32, i32
  }
  func.func @transform_25(%arg0: i32) -> (i32, i32) {
    %c0_i32 = arith.constant 0 : i32
    %c0_i32_0 = arith.constant 0 : i32
    %c0_i32_1 = arith.constant 0 : i32
    return %c0_i32, %c0_i32_0 : i32, i32
  }
  func.func @transform_26(%arg0: i32) -> (i32, i32) {
    %c0_i32 = arith.constant 0 : i32
    %c0_i32_0 = arith.constant 0 : i32
    %c0_i32_1 = arith.constant 0 : i32
    return %c0_i32, %c0_i32_0 : i32, i32
  }
  func.func @transform_27(%arg0: i32) -> (i32, i32) {
    %c0_i32 = arith.constant 0 : i32
    %c0_i32_0 = arith.constant 0 : i32
    %c0_i32_1 = arith.constant 0 : i32
    return %c0_i32, %c0_i32_0 : i32, i32
  }
  func.func @transform_28(%arg0: i32) -> (i32, i32) {
    %c0_i32 = arith.constant 0 : i32
    %c0_i32_0 = arith.constant 0 : i32
    %c0_i32_1 = arith.constant 0 : i32
    return %c0_i32, %c0_i32_0 : i32, i32
  }
  func.func @transform_29(%arg0: i32) -> (i32, i32) {
    %c0_i32 = arith.constant 0 : i32
    %c0_i32_0 = arith.constant 0 : i32
    %c0_i32_1 = arith.constant 0 : i32
    return %c0_i32, %c0_i32_0 : i32, i32
  }
}

</mosaic_0001>

<bundles_post_ra>
// kernel: tpu_custom_call.1
= control target key start
LH: loop header
LB: loop body
LE: loop exit
PB: predicated region body
PF: predicated region fallthrough
CT: control target
= control target key end

     0   :  { %s4941_s6 = smov 1   ;;  %s4942_s10 = smov 2   ;;  %s5850_s0 = inlined_call_operand.smem [shape: u32[30], index: -1, kind: input, shape index: {}] }
   0x1   :  { %s5003_s5 = sld [smem:[%s5850_s0]]   ;;  %s4943_s14 = smov 3  }
   0x2   :  { %s5008_s9 = sld [smem:[%s5850_s0 + %s4941_s6]]   ;;  %s4944_s18 = smov 4  }
   0x3   :  { %s5013_s13 = sld [smem:[%s5850_s0 + %s4942_s10]]   ;;  %s4945_s22 = smov 5  }
   0x4   :  { %s5018_s17 = sld [smem:[%s5850_s0 + %s4943_s14]]   ;;  %s4946_s26 = smov 6  }
   0x5   :  { %s5023_s21 = sld [smem:[%s5850_s0 + %s4944_s18]]   ;;  %s4947_s30 = smov 7  }
   0x6   :  { %s5028_s25 = sld [smem:[%s5850_s0 + %s4945_s22]]   ;;  %s4948_s4 = smov 8  }
   0x7   :  { %s5033_s29 = sld [smem:[%s5850_s0 + %s4946_s26]]   ;;  %s4949_s10 = smov 9  }
   0x8   :  { %5886 = sst [smem:[#allocation33_spill]] %s5008_s9  ;;  %s4950_s15 = smov 10  }
   0x9   :  { %s5038_s3 = sld [smem:[%s5850_s0 + %s4947_s30]]   ;;  %s4951_s20 = smov 11  }
   0xa   :  { %5887 = sst [smem:[#allocation34_spill]] %s5018_s17  ;;  %s4952_s26 = smov 12  }
   0xb   :  { %5888 = sst [smem:[#allocation35_spill]] %s5023_s21  ;;  %s4953_s1 = smov 13  }
   0xc   :  { %s5043_s8 = sld [smem:[%s5850_s0 + %s4948_s4]]   ;;  %s4954_s7 = smov 14  }
   0xd   :  { %s5048_s14 = sld [smem:[%s5850_s0 + %s4949_s10]]   ;;  %s4956_s22 = smov 16  }
   0xe   :  { %s5053_s19 = sld [smem:[%s5850_s0 + %s4950_s15]]   ;;  %s4955_s15 = smov 15  }
   0xf   :  { %s5058_s24 = sld [smem:[%s5850_s0 + %s4951_s20]]   ;;  %s4957_s28 = smov 17  }
  0x10   :  { %s5063_s30 = sld [smem:[%s5850_s0 + %s4952_s26]]  }
  0x11   :  { %s5068_s6 = sld [smem:[%s5850_s0 + %s4953_s1]]   ;;  %s4969_s1 = smov 29  }
  0x12   :  { %s5073_s12 = sld [smem:[%s5850_s0 + %s4954_s7]]   ;;  %s4958_s7 = smov 18  }
  0x13   :  { %s5078_s20 = sld [smem:[%s5850_s0 + %s4955_s15]]   ;;  %s4959_s15 = smov 19  }
  0x14   :  { %s5083_s27 = sld [smem:[%s5850_s0 + %s4956_s22]]   ;;  %s4960_s22 = smov 20  }
  0x15   :  { %5889 = sst [smem:[#allocation36_spill]] %s5058_s24 }
  0x16   :  { %5890 = sst [smem:[#allocation37_spill]] %s5063_s30 }
  0x17   :  { %s5088_s4 = sld [smem:[%s5850_s0 + %s4957_s28]]   ;;  %s4961_s28 = smov 21  }
  0x18   :  { %5891 = sst [smem:[#allocation38_spill]] %s5073_s12 }
  0x19   :  { %s5093_s12 = sld [smem:[%s5850_s0 + %s4958_s7]]   ;;  %s4962_s7 = smov 22  }
  0x1a   :  { %5892 = sst [smem:[#allocation39_spill]] %s5083_s27 }
  0x1b   :  { %s5098_s30 = sld [smem:[%s5850_s0 + %s4959_s15]]   ;;  %s4963_s15 = smov 23  }
  0x1c   :  { %s5103_s27 = sld [smem:[%s5850_s0 + %s4960_s22]]   ;;  %s4964_s22 = smov 24  }
  0x1d   :  { %5893 = sst [smem:[#allocation40_spill]] %s5088_s4 }
  0x1e   :  { %s5108_s4 = sld [smem:[%s5850_s0 + %s4961_s28]]   ;;  %s4965_s28 = smov 25  }
  0x1f   :  { %s5113_s24 = sld [smem:[%s5850_s0 + %s4962_s7]]   ;;  %s4966_s7 = smov 26  }
  0x20   :  { %s5123_s17 = sld [smem:[%s5850_s0 + %s4964_s22]]   ;;  %s4968_s22 = smov 28  }
  0x21   :  { %5894 = sst [smem:[#allocation41_spill]] %s5098_s30 }
  0x22   :  { %s5118_s30 = sld [smem:[%s5850_s0 + %s4963_s15]]   ;;  %s4967_s15 = smov 27  }
  0x23   :  { %s5128_s21 = sld [smem:[%s5850_s0 + %s4965_s28]]  }
  0x24   :  { %s5133_s9 = sld [smem:[%s5850_s0 + %s4966_s7]]  }
  0x26   :  { %5896 = sst [smem:[#allocation43_spill]] %s5123_s17 }
  0x27   :  { %s3576_s17 = sld [smem:[%s5850_s0 + %s4968_s22]]  }
  0x28   :  { %5895 = sst [smem:[#allocation42_spill]] %s5118_s30 }
  0x29   :  { %5897 = sst [smem:[#allocation44_spill]] %s5128_s21 }
  0x2a   :  { %s5138_s30 = sld [smem:[%s5850_s0 + %s4967_s15]]  }
  0x2b   :  { %s5146_s21 = sld [smem:[%s5850_s0 + %s4969_s1]]  }
  0x2d   :  { %v64_v0 = vstv %s3576_s17 }
  0x2e   :  { %65 = vst [vmem:[#allocation2] sm:$0x1] %v64_v0 }
  0x2f   :  { %66 = vsyncpa [#allocation4], 0 }
  0x30   :  { %67 = vsyncpa [#allocation6], 0 }
  0x31   :  { %68 = vsyncpa [#allocation9], 0 }
  0x32   :  { %69 = vsyncpa [#allocation12], 0 }
  0x33   :  { %70 = vsyncpa [#allocation15], 0 }
  0x34   :  { %71 = vsyncpa [#allocation18], 0 }
  0x35   :  { %72 = vsyncpa [#allocation21], 0 }
  0x36   :  { %73 = vsyncpa [#allocation24], 0  ;;  %s4970_s7 = smov [#allocation5]   ;;  %s4971_s11 = smov [#allocation8]  }
  0x37   :  { %s94_s10 = sshll.u32 %s4970_s7, 4  ;;  %s118_s15 = sshll.u32 %s4971_s11, 4  ;;  %s95_s10 = int_to_ptr.vmem [resolvable:$true] %s94_s10  ;;  %s119_s15 = int_to_ptr.vmem [resolvable:$true] %s118_s15 }
  0x38   :  { %s4617_s0 = scalar_lea.hbm %s5013_s13, 32 }
  0x39   :  { %p4618_p0 = scmp.ne.s32.totalorder %s5013_s13, %s4617_s0  ;;  %p4621_p1 = scmp.lt.u32.totalorder %s4617_s0, %s5013_s13 }
  0x3b   :  { %p4623_p2 = pnand %p4621_p1, %p4618_p0 }
  0x3d   :  { %4626 = shalt.err (!%p4623_p2)
}
  0x3e   :  { %s4627_s17 = scalar_lea.vmem %s95_s10, 32  ;;  %p4632_p4 = scmp.lt.s32.totalorder %s95_s10, %s95_s10 }
  0x3f   :  { %p4628_p3 = scmp.ne.s32.totalorder %s95_s10, %s4627_s17  ;;  %p4633_p5 = scmp.lt.s32.totalorder %s4627_s17, %s4627_s17 }
  0x41   :  { %p4634_p6 = por %p4633_p5, %p4632_p4 }
  0x43   :  { %p4635_p7 = pnand %p4634_p6, %p4628_p3 }
  0x45   :  { %4638 = shalt.err (!%p4635_p7)
}
  0x46   :  { %97 = dma.hbm_to_vmem [thread:$0]  %s5013_s13, 32, %s95_s10, [#allocation6]  }
  0x47   :  { %s4639_s16 = scalar_lea.hbm %s5033_s29, 16 }
  0x48   :  { %p4640_p8 = scmp.ne.s32.totalorder %s5033_s29, %s4639_s16  ;;  %p4643_p9 = scmp.lt.u32.totalorder %s4639_s16, %s5033_s29 }
  0x4a   :  { %p4645_p10 = pnand %p4643_p9, %p4640_p8 }
  0x4c   :  { %4648 = shalt.err (!%p4645_p10)
}
  0x4d   :  { %s4649_s18 = scalar_lea.vmem %s119_s15, 16  ;;  %s4653_s22 = scalar_lea.vmem %s119_s15, 32 }
  0x4e   :  { %p4650_p11 = scmp.ne.s32.totalorder %s119_s15, %s4649_s18  ;;  %p4654_p12 = scmp.lt.s32.totalorder %s119_s15, %s119_s15 }
  0x4f   :  { %p4655_p13 = scmp.lt.s32.totalorder %s4653_s22, %s4649_s18 }
  0x51   :  { %p4656_p0 = por %p4655_p13, %p4654_p12 }
  0x53   :  { %p4657_p1 = pnand %p4656_p0, %p4650_p11 }
  0x55   :  { %4660 = shalt.err (!%p4657_p1)
}
  0x56   :  { %121 = dma.hbm_to_vmem [thread:$0]  %s5033_s29, 16, %s119_s15, [#allocation9]  }
  0x57   :  { %s4972_s23 = smov [#allocation11]   ;;  %s4973_s26 = smov [#allocation14]  }
  0x58   :  { %s140_s13 = sshll.u32 %s4972_s23, 4  ;;  %s162_s1 = sshll.u32 %s4973_s26, 4  ;;  %s141_s13 = int_to_ptr.vmem [resolvable:$true] %s140_s13  ;;  %s163_s1 = int_to_ptr.vmem [resolvable:$true] %s162_s1 }
  0x59   :  { %s4661_s28 = scalar_lea.hbm %s5043_s8, 48 }
  0x5a   :  { %p4662_p2 = scmp.ne.s32.totalorder %s5043_s8, %s4661_s28  ;;  %p4665_p3 = scmp.lt.u32.totalorder %s4661_s28, %s5043_s8 }
  0x5c   :  { %p4667_p4 = pnand %p4665_p3, %p4662_p2 }
  0x5e   :  { %4670 = shalt.err (!%p4667_p4)
}
  0x5f   :  { %s4671_s2 = scalar_lea.vmem %s141_s13, 48  ;;  %s4675_s7 = scalar_lea.vmem %s141_s13, 64 }
  0x60   :  { %p4672_p5 = scmp.ne.s32.totalorder %s141_s13, %s4671_s2  ;;  %p4676_p6 = scmp.lt.s32.totalorder %s141_s13, %s141_s13 }
  0x61   :  { %p4677_p7 = scmp.lt.s32.totalorder %s4675_s7, %s4671_s2 }
  0x63   :  { %p4678_p8 = por %p4677_p7, %p4676_p6 }
  0x65   :  { %p4679_p9 = pnand %p4678_p8, %p4672_p5 }
  0x67   :  { %4682 = shalt.err (!%p4679_p9)
}
  0x68   :  { %143 = dma.hbm_to_vmem [thread:$0]  %s5043_s8, 48, %s141_s13, [#allocation12]  }
  0x69   :  { %s4683_s29 = scalar_lea.hbm %s5053_s19, 16 }
  0x6a   :  { %p4684_p10 = scmp.ne.s32.totalorder %s5053_s19, %s4683_s29  ;;  %p4687_p11 = scmp.lt.u32.totalorder %s4683_s29, %s5053_s19 }
  0x6c   :  { %p4689_p12 = pnand %p4687_p11, %p4684_p10 }
  0x6e   :  { %4692 = shalt.err (!%p4689_p12)
}
  0x6f   :  { %s4693_s10 = scalar_lea.vmem %s163_s1, 16  ;;  %s4697_s11 = scalar_lea.vmem %s163_s1, 32 }
  0x70   :  { %p4694_p13 = scmp.ne.s32.totalorder %s163_s1, %s4693_s10  ;;  %p4698_p0 = scmp.lt.s32.totalorder %s163_s1, %s163_s1 }
  0x71   :  { %p4699_p1 = scmp.lt.s32.totalorder %s4697_s11, %s4693_s10 }
  0x73   :  { %p4700_p2 = por %p4699_p1, %p4698_p0 }
  0x75   :  { %p4701_p3 = pnand %p4700_p2, %p4694_p13 }
  0x77   :  { %4704 = shalt.err (!%p4701_p3)
}
  0x78   :  { %165 = dma.hbm_to_vmem [thread:$0]  %s5053_s19, 16, %s163_s1, [#allocation15]  }
  0x79   :  { %s4974_s15 = smov [#allocation17]   ;;  %s4975_s0 = smov [#allocation20]  }
  0x7a   :  { %s188_s8 = sshll.u32 %s4974_s15, 4  ;;  %s214_s17 = sshll.u32 %s4975_s0, 4  ;;  %s189_s8 = int_to_ptr.vmem [resolvable:$true] %s188_s8  ;;  %s215_s17 = int_to_ptr.vmem [resolvable:$true] %s214_s17 }
  0x7b   :  { %s4705_s16 = scalar_lea.hbm %s5078_s20, 16 }
  0x7c   :  { %p4706_p4 = scmp.ne.s32.totalorder %s5078_s20, %s4705_s16  ;;  %p4709_p5 = scmp.lt.u32.totalorder %s4705_s16, %s5078_s20 }
  0x7e   :  { %p4711_p6 = pnand %p4709_p5, %p4706_p4 }
  0x80   :  { %4714 = shalt.err (!%p4711_p6)
}
  0x81   :  { %s4715_s18 = scalar_lea.vmem %s189_s8, 16  ;;  %s4719_s22 = scalar_lea.vmem %s189_s8, 32 }
  0x82   :  { %p4716_p7 = scmp.ne.s32.totalorder %s189_s8, %s4715_s18  ;;  %p4720_p8 = scmp.lt.s32.totalorder %s189_s8, %s189_s8 }
  0x83   :  { %p4721_p9 = scmp.lt.s32.totalorder %s4719_s22, %s4715_s18 }
  0x85   :  { %p4722_p10 = por %p4721_p9, %p4720_p8 }
  0x87   :  { %p4723_p11 = pnand %p4722_p10, %p4716_p7 }
  0x89   :  { %4726 = shalt.err (!%p4723_p11)
}
  0x8a   :  { %191 = dma.hbm_to_vmem [thread:$0]  %s5078_s20, 16, %s189_s8, [#allocation18]  }
  0x8b   :  { %s4727_s19 = scalar_lea.hbm %s5103_s27, 16 }
  0x8c   :  { %p4728_p12 = scmp.ne.s32.totalorder %s5103_s27, %s4727_s19  ;;  %p4731_p13 = scmp.lt.u32.totalorder %s4727_s19, %s5103_s27 }
  0x8e   :  { %p4733_p0 = pnand %p4731_p13, %p4728_p12 }
  0x90   :  { %4736 = shalt.err (!%p4733_p0)
}
  0x91   :  { %s4737_s23 = scalar_lea.vmem %s215_s17, 16  ;;  %s4741_s13 = scalar_lea.vmem %s215_s17, 32 }
  0x92   :  { %p4738_p1 = scmp.ne.s32.totalorder %s215_s17, %s4737_s23  ;;  %p4742_p2 = scmp.lt.s32.totalorder %s215_s17, %s215_s17 }
  0x93   :  { %p4743_p3 = scmp.lt.s32.totalorder %s4741_s13, %s4737_s23 }
  0x95   :  { %p4744_p4 = por %p4743_p3, %p4742_p2 }
  0x97   :  { %p4745_p5 = pnand %p4744_p4, %p4738_p1 }
  0x99   :  { %4748 = shalt.err (!%p4745_p5)
}
  0x9a   :  { %217 = dma.hbm_to_vmem [thread:$0]  %s5103_s27, 16, %s215_s17, [#allocation21]  }
  0x9b   :  { %s4976_s26 = smov [#allocation3]   ;;  %s4749_s1 = scalar_lea.hbm %s5003_s5, 256 }
  0x9c   :  { %s79_s20 = sshll.u32 %s4976_s26, 4  ;;  %p4750_p6 = scmp.ne.s32.totalorder %s5003_s5, %s4749_s1  ;;  %s80_s20 = int_to_ptr.vmem [resolvable:$true] %s79_s20 }
  0x9d   :  { %p4753_p7 = scmp.lt.u32.totalorder %s4749_s1, %s5003_s5 }
  0x9f   :  { %p4755_p8 = pnand %p4753_p7, %p4750_p6 }
  0xa1   :  { %4758 = shalt.err (!%p4755_p8)
}
  0xa2   :  { %s4759_s28 = scalar_lea.vmem %s80_s20, 256  ;;  %p4764_p10 = scmp.lt.s32.totalorder %s80_s20, %s80_s20 }
  0xa3   :  { %p4760_p9 = scmp.ne.s32.totalorder %s80_s20, %s4759_s28  ;;  %p4765_p11 = scmp.lt.s32.totalorder %s4759_s28, %s4759_s28 }
  0xa5   :  { %p4766_p12 = por %p4765_p11, %p4764_p10 }
  0xa7   :  { %p4767_p13 = pnand %p4766_p12, %p4760_p9 }
  0xa9   :  { %4770 = shalt.err (!%p4767_p13)
}
  0xaa   :  { %s4977_s2 = smov 128   ;;  %s4978_s27 = smov 8  }
  0xab   :  { %85 = dma.hbm_to_vmem [thread:$0]  %s5003_s5, 256, %s80_s20, [#allocation4], %s4977_s2, %s4977_s2, %s4978_s27  }
  0xac   :  { %s4979_s7 = smov [#allocation7]   ;;  %s4980_s10 = smov [#allocation10]  }
  0xad   :  { %s108_s29 = sshll.u32 %s4979_s7, 4  ;;  %s127_s11 = sshll.u32 %s4980_s10, 4  ;;  %s109_s29 = int_to_ptr.vmem [resolvable:$true] %s108_s29  ;;  %s128_s11 = int_to_ptr.vmem [resolvable:$true] %s127_s11 }
  0xae   :  { %s4771_s15 = scalar_lea.hbm %s5028_s25, 16 }
  0xaf   :  { %p4772_p0 = scmp.ne.s32.totalorder %s5028_s25, %s4771_s15  ;;  %p4775_p1 = scmp.lt.u32.totalorder %s4771_s15, %s5028_s25 }
  0xb1   :  { %p4777_p2 = pnand %p4775_p1, %p4772_p0 }
  0xb3   :  { %4780 = shalt.err (!%p4777_p2)
}
  0xb4   :  { %s4781_s8 = scalar_lea.vmem %s109_s29, 16  ;;  %s4785_s0 = scalar_lea.vmem %s109_s29, 32 }
  0xb5   :  { %p4782_p3 = scmp.ne.s32.totalorder %s109_s29, %s4781_s8  ;;  %p4786_p4 = scmp.lt.s32.totalorder %s109_s29, %s109_s29 }
  0xb6   :  { %p4787_p5 = scmp.lt.s32.totalorder %s4785_s0, %s4781_s8 }
  0xb8   :  { %p4788_p6 = por %p4787_p5, %p4786_p4 }
  0xba   :  { %p4789_p7 = pnand %p4788_p6, %p4782_p3 }
  0xbc   :  { %4792 = shalt.err (!%p4789_p7)
}
  0xbd   :  { %111 = dma.hbm_to_vmem [thread:$0]  %s5028_s25, 16, %s109_s29, [#allocation6]  }
  0xbe   :  { %s4793_s5 = scalar_lea.hbm %s5038_s3, 576 }
  0xbf   :  { %p4794_p8 = scmp.ne.s32.totalorder %s5038_s3, %s4793_s5  ;;  %p4797_p9 = scmp.lt.u32.totalorder %s4793_s5, %s5038_s3 }
  0xc1   :  { %p4799_p10 = pnand %p4797_p9, %p4794_p8 }
  0xc3   :  { %4802 = shalt.err (!%p4799_p10)
}
  0xc4   :  { %s4803_s17 = scalar_lea.vmem %s128_s11, 576  ;;  %p4808_p12 = scmp.lt.s32.totalorder %s128_s11, %s128_s11 }
  0xc5   :  { %p4804_p11 = scmp.ne.s32.totalorder %s128_s11, %s4803_s17  ;;  %p4809_p13 = scmp.lt.s32.totalorder %s4803_s17, %s4803_s17 }
  0xc7   :  { %p4810_p0 = por %p4809_p13, %p4808_p12 }
  0xc9   :  { %p4811_p1 = pnand %p4810_p0, %p4804_p11 }
  0xcb   :  { %4814 = shalt.err (!%p4811_p1)
}
  0xcc   :  { %s4981_s16 = smov 192   ;;  %s4982_s18 = smov 12  }
  0xcd   :  { %133 = dma.hbm_to_vmem [thread:$0]  %s5038_s3, 576, %s128_s11, [#allocation9], %s4981_s16, %s4981_s16, %s4982_s18  }
  0xce   :  { %s4983_s25 = smov [#allocation13]   ;;  %s4815_s19 = scalar_lea.hbm %s5048_s14, 128 }
  0xcf   :  { %s149_s22 = sshll.u32 %s4983_s25, 4  ;;  %p4816_p2 = scmp.ne.s32.totalorder %s5048_s14, %s4815_s19  ;;  %s150_s22 = int_to_ptr.vmem [resolvable:$true] %s149_s22 }
  0xd0   :  { %p4819_p3 = scmp.lt.u32.totalorder %s4815_s19, %s5048_s14 }
  0xd2   :  { %p4821_p4 = pnand %p4819_p3, %p4816_p2 }
  0xd4   :  { %4824 = shalt.err (!%p4821_p4)
}
  0xd5   :  { %s4825_s23 = scalar_lea.vmem %s150_s22, 128  ;;  %p4830_p6 = scmp.lt.s32.totalorder %s150_s22, %s150_s22 }
  0xd6   :  { %p4826_p5 = scmp.ne.s32.totalorder %s150_s22, %s4825_s23  ;;  %p4831_p7 = scmp.lt.s32.totalorder %s4825_s23, %s4825_s23 }
  0xd8   :  { %p4832_p8 = por %p4831_p7, %p4830_p6 }
  0xda   :  { %p4833_p9 = pnand %p4832_p8, %p4826_p5 }
  0xdc   :  { %4836 = shalt.err (!%p4833_p9)
}
  0xdd   :  { %s4984_s13 = smov 64   ;;  %s4985_s3 = smov 4  }
  0xde   :  { %155 = dma.hbm_to_vmem [thread:$0]  %s5048_s14, 128, %s150_s22, [#allocation12], %s4984_s13, %s4984_s13, %s4985_s3  }
  0xdf   :  { %s4986_s26 = smov [#allocation16]   ;;  %s4987_s1 = smov [#allocation19]  }
  0xe0   :  { %s176_s20 = sshll.u32 %s4986_s26, 4  ;;  %s202_s28 = sshll.u32 %s4987_s1, 4  ;;  %s177_s20 = int_to_ptr.vmem [resolvable:$true] %s176_s20  ;;  %s203_s28 = int_to_ptr.vmem [resolvable:$true] %s202_s28 }
  0xe1   :  { %s4837_s2 = scalar_lea.hbm %s5068_s6, 48 }
  0xe2   :  { %p4838_p10 = scmp.ne.s32.totalorder %s5068_s6, %s4837_s2  ;;  %p4841_p11 = scmp.lt.u32.totalorder %s4837_s2, %s5068_s6 }
  0xe4   :  { %p4843_p12 = pnand %p4841_p11, %p4838_p10 }
  0xe6   :  { %4846 = shalt.err (!%p4843_p12)
}
  0xe7   :  { %s4847_s27 = scalar_lea.vmem %s177_s20, 48  ;;  %s4851_s7 = scalar_lea.vmem %s177_s20, 64 }
  0xe8   :  { %p4848_p13 = scmp.ne.s32.totalorder %s177_s20, %s4847_s27  ;;  %p4852_p0 = scmp.lt.s32.totalorder %s177_s20, %s177_s20 }
  0xe9   :  { %p4853_p1 = scmp.lt.s32.totalorder %s4851_s7, %s4847_s27 }
  0xeb   :  { %p4854_p2 = por %p4853_p1, %p4852_p0 }
  0xed   :  { %p4855_p3 = pnand %p4854_p2, %p4848_p13 }
  0xef   :  { %4858 = shalt.err (!%p4855_p3)
}
  0xf0   :  { %179 = dma.hbm_to_vmem [thread:$0]  %s5068_s6, 48, %s177_s20, [#allocation15]  }
  0xf1   :  { %s4859_s14 = scalar_lea.hbm %s5093_s12, 16 }
  0xf2   :  { %p4860_p4 = scmp.ne.s32.totalorder %s5093_s12, %s4859_s14  ;;  %p4863_p5 = scmp.lt.u32.totalorder %s4859_s14, %s5093_s12 }
  0xf4   :  { %p4865_p6 = pnand %p4863_p5, %p4860_p4 }
  0xf6   :  { %4868 = shalt.err (!%p4865_p6)
}
  0xf7   :  { %s4869_s29 = scalar_lea.vmem %s203_s28, 16  ;;  %s4873_s10 = scalar_lea.vmem %s203_s28, 32 }
  0xf8   :  { %p4870_p7 = scmp.ne.s32.totalorder %s203_s28, %s4869_s29  ;;  %p4874_p8 = scmp.lt.s32.totalorder %s203_s28, %s203_s28 }
  0xf9   :  { %p4875_p9 = scmp.lt.s32.totalorder %s4873_s10, %s4869_s29 }
  0xfb   :  { %p4876_p10 = por %p4875_p9, %p4874_p8 }
  0xfd   :  { %p4877_p11 = pnand %p4876_p10, %p4870_p7 }
  0xff   :  { %4880 = shalt.err (!%p4877_p11)
}
 0x100   :  { %205 = dma.hbm_to_vmem [thread:$0]  %s5093_s12, 16, %s203_s28, [#allocation18]  }
 0x101   :  { %s4988_s11 = smov [#allocation22]   ;;  %s4989_s15 = smov [#allocation23]  }
 0x102   :  { %s223_s6 = sshll.u32 %s4988_s11, 4  ;;  %s235_s8 = sshll.u32 %s4989_s15, 4  ;;  %s224_s6 = int_to_ptr.vmem [resolvable:$true] %s223_s6  ;;  %s5199_s8 = int_to_ptr.vmem [resolvable:$true] %s235_s8 }
 0x103   :  { %s4881_s0 = scalar_lea.hbm %s5108_s4, 512 }
 0x104   :  { %p4882_p12 = scmp.ne.s32.totalorder %s5108_s4, %s4881_s0  ;;  %p4885_p13 = scmp.lt.u32.totalorder %s4881_s0, %s5108_s4 }
 0x106   :  { %p4887_p0 = pnand %p4885_p13, %p4882_p12 }
 0x108   :  { %4890 = shalt.err (!%p4887_p0)
}
 0x109   :  { %s4891_s5 = scalar_lea.vmem %s224_s6, 512  ;;  %p4896_p2 = scmp.lt.s32.totalorder %s224_s6, %s224_s6 }
 0x10a   :  { %p4892_p1 = scmp.ne.s32.totalorder %s224_s6, %s4891_s5  ;;  %p4897_p3 = scmp.lt.s32.totalorder %s4891_s5, %s4891_s5 }
 0x10c   :  { %p4898_p4 = por %p4897_p3, %p4896_p2 }
 0x10e   :  { %p4899_p5 = pnand %p4898_p4, %p4892_p1 }
 0x110   :  { %4902 = shalt.err (!%p4899_p5)
}
 0x111   :  { %229 = dma.hbm_to_vmem [thread:$0]  %s5108_s4, 512, %s224_s6, [#allocation21], %s4984_s13, %s4984_s13, %s4985_s3  }
 0x112   :  { %s4903_s12 = scalar_lea.hbm %s5113_s24, 512 }
 0x113   :  { %p4904_p6 = scmp.ne.s32.totalorder %s5113_s24, %s4903_s12  ;;  %p4907_p7 = scmp.lt.u32.totalorder %s4903_s12, %s5113_s24 }
 0x115   :  { %p4909_p8 = pnand %p4907_p7, %p4904_p6 }
 0x117   :  { %4912 = shalt.err (!%p4909_p8)
}
 0x118   :  { %s4913_s17 = scalar_lea.vmem %s5199_s8, 512  ;;  %p4918_p10 = scmp.lt.s32.totalorder %s5199_s8, %s5199_s8 }
 0x119   :  { %p4914_p9 = scmp.ne.s32.totalorder %s5199_s8, %s4913_s17  ;;  %p4919_p11 = scmp.lt.s32.totalorder %s4913_s17, %s4913_s17 }
 0x11b   :  { %p4920_p12 = por %p4919_p11, %p4918_p10 }
 0x11d   :  { %p4921_p13 = pnand %p4920_p12, %p4914_p9 }
 0x11f   :  { %4924 = shalt.err (!%p4921_p13)
}
 0x120   :  { %241 = dma.hbm_to_vmem [thread:$0]  %s5113_s24, 512, %s5199_s8, [#allocation24], %s4984_s13, %s4984_s13, %s4985_s3  }
 0x121   :  { %4925 = dma.done.wait [#allocation4], 256  }
 0x122   :  { %4926 = vsyncadd [#allocation4], 4294967040 }
 0x123   :  { %4927 = dma.done.wait [#allocation6], 48  }
 0x124   :  { %4928 = vsyncadd [#allocation6], 4294967248 }
 0x125   :  { %4929 = dma.done.wait [#allocation9], 592  }
 0x126   :  { %4930 = vsyncadd [#allocation9], 4294966704 }
 0x127   :  { %4931 = dma.done.wait [#allocation12], 176  }
 0x128   :  { %4932 = vsyncadd [#allocation12], 4294967120 }
 0x129   :  { %4933 = dma.done.wait [#allocation15], 64  }
 0x12a   :  { %4934 = vsyncadd [#allocation15], 4294967232 }
 0x12b   :  { %4935 = dma.done.wait [#allocation18], 32  }
 0x12c   :  { %4936 = vsyncadd [#allocation18], 4294967264 }
 0x12d   :  { %4937 = dma.done.wait [#allocation21], 528  }
 0x12e   :  { %4938 = vsyncadd [#allocation21], 4294966768 }
 0x12f   :  { %4939 = dma.done.wait [#allocation24], 512  }
 0x130   :  { %4940 = vsyncadd [#allocation24], 4294966784  ;;  %v5872_v1 = vmov 0.0   ;;  %v5861_v2 = vmov 0   ;;  %vm4992_vm0 = vmmov 0   ;;  %vm371_vm1 = vcmask 1040384  }
 0x131   :  { %3940 = vmatprep.subr.bf16.mxu1 %v5872_v1  ;;  %415 = vmatprep.mubr.bf16.mxu0 %v5861_v2  ;;  %v4475_v3 = vld [vmem:[#allocation10 + $0x4] ss:$12 sps:$4 sm:$0xff]   ;;  %v373_v4 = vsel %vm371_vm1, 65535, %v5861_v2  ;;  %v4477_v5 = vld [vmem:[#allocation10] ss:$12 sps:$4 sm:$0xff]   ;;  %vm367_vm2 = vcmask 138240   ;;  %v328_v34 = vlaneseq }
 0x132   :  { %3944 = vmatprep.mubr.msk.bf16.mxu1 %vm4992_vm0, %v5872_v1  ;;  %383 = vmatprep.subr.bf16.mxu0 %v4475_v3  ;;  %v4478_v6 = vld [vmem:[#allocation10 + $0x8] ss:$12 sps:$4 sm:$0xff]   ;;  %v324_v7 = vld [vmem:[#allocation10 + $0x18] sm:$0x11]  ;;  %s5898_s24 = sld [smem:[#allocation33_spill]]  ;;  %vm490_vm3 = vcmask 1046528  }
 0x133   :  { %384 = vmatpush1.bf16.msra.mxu0 %v4477_v5  ;;  %v3582_v8 = vcombine.high %v324_v7, %v324_v7  ;;  %v3581_v9 = vcombine.low %v324_v7, %v324_v7  ;;  %v4481_v10 = vld [vmem:[#allocation10 + $0x20] ss:$0 sps:$4 sm:$0x11]   ;;  %v313_v11 = vld [vmem:[#allocation3] sm:$0xff]  ;;  %3941 = vmatpush3.bf16.msra.mxu1 %v4478_v6  ;;  %v314_v12 = vld [vmem:[#allocation3 + $0x8] sm:$0xff]  ;;  %vm491_vm4 = vcmask 1047552  }
 0x134   :  { %3942 = vmatprep.subr.bf16.mxu1 %v5872_v1  ;;  %v381_v15 = vand.u32 %v4481_v10, %v373_v4  ;;  %v319_v16 = vpack.c.bf16 %v314_v12, %v313_v11  ;;  %v4482_v17 = vld [vmem:[#allocation13] sm:$0xff]   ;;  %v4993_v18 = vmov 65535   ;;  %s5899_s4 = sld [smem:[#allocation35_spill]]  ;;  %vm483_vm5 = vcmask 121856   ;;  %v326_v38 = vld [vmem:[#allocation11] sm:$0x7] }
 0x135   :  { %v378_v13 = vand.u32 %v3582_v8, %v373_v4  ;;  %v375_v14 = vand.u32 %v3581_v9, %v373_v4  ;;  %v492_v19 = vsel %vm490_vm3, 4294967295, %v4993_v18  ;;  %vm546_vm6 = vcmask 130048   ;;  %s5900_s16 = sld [smem:[#allocation34_spill]]  ;;  %s5901_s18 = sld [smem:[#allocation36_spill]] }
 0x136   :  { %v493_v20 = vsel %vm491_vm4, %v492_v19, 0  ;;  %v5247_v35 = vshrl.u32 %v328_v34, 7  ;;  %vm929_vm7 = vcmask 261120   ;;  %s5906_s25 = sld [smem:[#allocation37_spill]]  ;;  %s5907_s22 = sld [smem:[#allocation38_spill]]  ;;  %vm3212_vm8 = vcmask 523264  }
 0x137   :  { %385 = vmatprep.subr.bf16.mxu0 %v378_v13  ;;  %3943 = vmatpush3.bf16.msra.mxu1 %v381_v15  ;;  %v495_v21 = vand.u32 %v4482_v17, %v493_v20  ;;  %s5911_s19 = sld [smem:[#allocation39_spill]]  ;;  %s5931_s23 = sld [smem:[#allocation41_spill]]  ;;  %vm3330_vm9 = vcmask 1043456   ;;  %vm3326_vm10 = vcmask 64512   ;;  %vm3535_vm11 = vcmask 1024  }
 0x138   :  { %386 = vmatpush1.bf16.msra.mxu0 %v375_v14  ;;  %v315_v22 = vld [vmem:[%s5898_s24] sm:$0xff]  ;;  %v316_v23 = vld [vmem:[%s5898_s24 + $0x8] sm:$0xff]  ;;  %v317_v25 = vld [vmem:[%s5898_s24 + $0x10] sm:$0xff]  ;;  %v338_v36 = vsub.s32 2, %v5247_v35  ;;  %v330_v37 = vsub.s32 0, %v5247_v35  ;;  %v334_v39 = vsub.s32 1, %v5247_v35 }
 0x139   :  { %3948 = vmatprep.subr.bf16.mxu0 %v495_v21  ;;  %v467_v24 = vpack.c.bf16 %v316_v23, %v315_v22  ;;  %v318_v26 = vld [vmem:[%s5898_s24 + $0x18] sm:$0xff]  ;;  %s5936_s13 = sld [smem:[#allocation40_spill]]  ;;  %s5937_s3 = sld [smem:[#allocation42_spill]] }
 0x13a   :  { %3945 = vmatmul.mubr.msk.bf16.vlgmr.msra.gmra.mrb[0].mxu1 %vm367_vm2, %v319_v16  ;;  %v468_v27 = vpack.c.bf16 %v318_v26, %v317_v25  ;;  %v3738_v28 = vld [vmem:[%s5899_s4] sm:$0xff]   ;;  %v3746_v31 = vld [vmem:[%s5899_s4 + $0x8] sm:$0xff]   ;;  %v339_v40 = vrot.slane %v326_v38, %v338_v36  ;;  %v331_v41 = vrot.slane %v326_v38, %v330_v37  ;;  %v335_v43 = vrot.slane %v326_v38, %v334_v39  ;;  %s5938_s26 = sld [smem:[#allocation44_spill]]  ;;  %s5939_s20 = sld [smem:[#allocation43_spill]] }
 0x13b   :  { %3584 = vmatmul.mubr.msk.bf16.vlgmr.msra.gmra.mrb[0].mxu0 %vm367_vm2, %v319_v16  ;;  %623 = vmatprep.mubr.f32.mxu1 %v5872_v1  ;;  %v5232_v29 = vunpack.c.l.bf16 %v3738_v28  ;;  %v5237_v30 = vunpack.c.h.bf16 %v3738_v28  ;;  %v5241_v32 = vunpack.c.l.bf16 %v3746_v31  ;;  %v5244_v33 = vunpack.c.h.bf16 %v3746_v31  ;;  %v3730_v59 = vld [vmem:[%s5900_s16] sm:$0xff]   ;;  %v4484_v63 = vld [vmem:[%s5901_s18 + $0x8] sm:$0xff]   ;;  %v4485_v4 = vld [vmem:[%s5901_s18 + $0x10] sm:$0xff]  }
 0x13c   :  { %3949 = vmatpush3.bf16.msra.mxu0 %v495_v21  ;;  %3950 = vmatprep.mubr.msk.bf16.mxu0 %vm483_vm5, %v467_v24  ;;  %v4483_v61 = vld [vmem:[%s5901_s18] sm:$0xff]   ;;  %v5260_v62 = vunpack.c.l.bf16 %v3730_v59  ;;  %v5267_v0 = vunpack.c.h.bf16 %v3730_v59  ;;  %v3745_v3 = vld [vmem:[%s5900_s16 + $0x8] sm:$0xff]   ;;  %v4486_v11 = vld [vmem:[%s5901_s18 + $0x18] sm:$0xff]  }
 0x13d   :  { %897 = vxpose.xlu0.b32.start [1/4] (short) (narrow) %v5232_v29, 16  ;;  %v5278_v5 = vunpack.c.l.bf16 %v3745_v3  ;;  %v5283_v6 = vunpack.c.h.bf16 %v3745_v3  ;;  %v4487_v12 = vld [vmem:[%s5901_s18 + $0x20] sm:$0xff]   ;;  %v4488_v13 = vld [vmem:[%s5901_s18 + $0x28] sm:$0xff]   ;;  %v4489_v14 = vld [vmem:[%s5901_s18 + $0x30] sm:$0xff]  }
 0x13e   :  { %5902 = vst [vmem:[#allocation45_spill] sm:$0xff] %v5260_v62  ;;  %5903 = vst [vmem:[#allocation46_spill] sm:$0xff] %v5267_v0  ;;  %v4490_v15 = vld [vmem:[%s5901_s18 + $0x38] sm:$0xff]   ;;  %v3586_v16 = vld [vmem:[#allocation14] ss:$0 sm:$0xff] }
 0x13f   :  { %5904 = vst [vmem:[#allocation47_spill] sm:$0xff] %v5278_v5  ;;  %5905 = vst [vmem:[#allocation48_spill] sm:$0xff] %v5283_v6 }
 0x141   :  { %898 = vxpose.xlu0.b32.cont [2/4] (short) (narrow) %v5237_v30, 16 }
 0x143   :  { %3951 = vmatmul.mubr.msk.bf16.vlgmr.msra.gmra.mrb[4].mxu0 %vm483_vm5, %v468_v27 }
 0x144   :  { %3958 = vmatprep.mubr.msk.f32.mxu0 %vm546_vm6, %v5232_v29 }
 0x145   :  { %899 = vxpose.xlu0.b32.cont [3/4] (short) (narrow) %v5241_v32, 16 }
 0x149   :  { %900 = vxpose.xlu0.b32.end [4/4] (short) (narrow) %v5244_v33, 16 }
 0x20d   :  { %v460_v44 = vpop.f32.mrb[0].mxu1 }
 0x20e   :  { %v417_v42 = vpop.f32.mrb[0].mxu0  ;;  %v461_v46 = vadd.f32 %v460_v44, %v339_v40  ;;  %v3946_v47 = vpop.f32.mrb[1].mxu1 }
 0x20f   :  { %v419_v45 = vpop.f32.mrb[1].mxu0  ;;  %v463_v49 = vpop.f32.mrb[2].mxu1  ;;  %v418_v50 = vadd.f32 %v417_v42, %v331_v41 }
 0x210   :  { %v421_v48 = vpop.f32.mrb[2].mxu0  ;;  %v464_v53 = vadd.f32 %v463_v49, %v339_v40  ;;  %v3947_v54 = vpop.f32.mrb[3].mxu1  ;;  %v420_v55 = vadd.f32 %v419_v45, %v335_v43 }
 0x211   :  { %v422_v51 = vadd.f32 %v421_v48, %v331_v41  ;;  %v423_v52 = vpop.f32.mrb[3].mxu0 }
 0x212   :  { %v424_v56 = vadd.f32 %v423_v52, %v335_v43  ;;  %v4332_v58 = vpack.c.bf16 %v464_v53, %v461_v46 }
 0x213   :  { %v4330_v57 = vpack.c.bf16 %v422_v51, %v418_v50 }
 0x214   :  { %v4328_v60 = vpack.c.bf16 %v424_v56, %v420_v55  ;;  %4333 = vmatprep.subr.bf16.mxu0 %v4332_v58 }
 0x215   :  { %4335 = vmatpush3.bf16.msra.mxu0 %v4332_v58 }
 0x216   :  { %4329 = vmatprep.subr.bf16.mxu1 %v4328_v60  ;;  %v3952_v7 = vpop.f32.mrb[4].mxu0 }
 0x217   :  { %4331 = vmatpush1.bf16.msra.mxu1 %v4330_v57  ;;  %v531_v8 = vpop.f32.mrb[5].mxu0  ;;  %v540_v34 = vadd.f32 %v3952_v7, %v3586_v16 }
 0x218   :  { %3964 = vmatprep.subr.bf16.mxu1 %v4483_v61  ;;  %3959 = vmatmul.mubr.msk.f32.vlgmr.msra.gmra.mrb[8].mxu0 %vm546_vm6, %v5237_v30  ;;  %v3953_v9 = vpop.f32.mrb[6].mxu0  ;;  %v532_v17 = vadd.f32 %v3586_v16, %v531_v8 }
 0x219   :  { %3961 = vmatprep.mubr.msk.f32.mxu0 %vm546_vm6, %v5241_v32  ;;  %v534_v10 = vpop.f32.mrb[7].mxu0  ;;  %v543_v46 = vadd.f32 %v3953_v9, %v3586_v16 }
 0x21a   :  { %3590 = vmatmul.mubr.msk.f32.vlgmr.msra.gmra.mrb[4].mxu1 %vm546_vm6, %v5260_v62  ;;  %v535_v21 = vadd.f32 %v3586_v16, %v534_v10 }
 0x21b   :  { %629 = vmatprep.mubr.f32.mxu1 %v5872_v1  ;;  %3965 = vmatpush3.bf16.msra.mxu1 %v4483_v61  ;;  %v5324_v61 = vpop.trf.xlu0 }
 0x21c   :  { %3966 = vmatprep.subr.bf16.mxu1 %v4484_v63  ;;  %3962 = vmatmul.mubr.msk.f32.gmra.mrb[10].mxu0 %vm546_vm6, %v5244_v33 }
 0x21d   :  { %3992 = vmatprep.mubr.msk.f32.mxu0 %vm929_vm7, %v5324_v61 }
 0x21e   :  { %3591 = vmatmul.mubr.msk.f32.gmra.mrb[6].mxu1 %vm546_vm6, %v5267_v0 }
 0x21f   :  { %635 = vmatprep.mubr.f32.mxu1 %v5872_v1  ;;  %3967 = vmatpush3.bf16.msra.mxu1 %v4484_v63 }
 0x220   :  { %3968 = vmatprep.subr.bf16.mxu1 %v4485_v4 }
 0x222   :  { %3592 = vmatmul.mubr.msk.f32.gmra.mrb[8].mxu1 %vm546_vm6, %v5278_v5 }
 0x223   :  { %641 = vmatprep.mubr.f32.mxu1 %v5872_v1  ;;  %3969 = vmatpush3.bf16.msra.mxu1 %v4485_v4 }
 0x224   :  { %3970 = vmatprep.subr.bf16.mxu1 %v4486_v11 }
 0x226   :  { %3593 = vmatmul.mubr.msk.f32.gmra.mrb[10].mxu1 %vm546_vm6, %v5283_v6 }
 0x227   :  { %3971 = vmatpush3.bf16.msra.mxu1 %v4486_v11 }
 0x228   :  { %3972 = vmatprep.subr.bf16.mxu1 %v4487_v12 }
 0x22b   :  { %3973 = vmatpush3.bf16.msra.mxu1 %v4487_v12 }
 0x22c   :  { %3974 = vmatprep.subr.bf16.mxu1 %v4488_v13 }
 0x22f   :  { %3975 = vmatpush3.bf16.msra.mxu1 %v4488_v13 }
 0x230   :  { %3976 = vmatprep.subr.bf16.mxu1 %v4489_v14 }
 0x233   :  { %3977 = vmatpush3.bf16.msra.mxu1 %v4489_v14 }
 0x234   :  { %3978 = vmatprep.subr.bf16.mxu1 %v4490_v15 }
 0x237   :  { %3979 = vmatpush3.bf16.msra.mxu1 %v4490_v15 }
 0x238   :  { %4016 = vmatprep.subr.bf16.mxu1 %v5872_v1 }
 0x2eb   :  { %v3960_v18 = vpop.f32.mrb[8].mxu0 }
 0x2ec   :  { %v726_v20 = vpop.f32.mrb[9].mxu0 }
 0x2ed   :  { %v625_v19 = vpop.f32.mrb[4].mxu1 }
 0x2ee   :  { %v745_v22 = vadd.f32 %v625_v19, %v532_v17  ;;  %v5294_v23 = vpop.f32.mrb[5].mxu1 }
 0x2ef   :  { %v3963_v25 = vpop.f32.mrb[10].mxu0 }
 0x2f0   :  { %v5296_v24 = vadd.f32 %v745_v22, %v726_v20  ;;  %v736_v27 = vpop.f32.mrb[11].mxu0 }
 0x2f1   :  { %v631_v26 = vpop.f32.mrb[6].mxu1 }
 0x2f2   :  { %v746_v28 = vadd.f32 %v631_v26, %v535_v21  ;;  %v5298_v31 = vpop.f32.mrb[7].mxu1  ;;  %v753_v38 = vmul.f32 0.2, %v5296_v24 }
 0x2f4   :  { %v5301_v40 = vadd.f32 %v3960_v18, %v746_v28  ;;  %v757_v47 = vmax.f32 %v5296_v24, %v753_v38 }
 0x2f5   :  { %v637_v41 = vpop.f32.mrb[8].mxu1 }
 0x2f6   :  { %v754_v42 = vmul.f32 0.2, %v5301_v40  ;;  %v747_v43 = vadd.f32 %v637_v41, %v540_v34  ;;  %v5304_v44 = vpop.f32.mrb[9].mxu1  ;;  %v1445_v45 = vpack.c.bf16 %v5301_v40, %v5296_v24  ;;  %v5476_v24 = vld [vmem:[%s5907_s22 + $0x20] sm:$0xff]  }
 0x2f8   :  { %v5309_v48 = vadd.f32 %v747_v43, %v736_v27  ;;  %v758_v49 = vmax.f32 %v5301_v40, %v754_v42  ;;  %v5328_v43 = vpop.trf.xlu0  ;;  %v5481_v40 = vld [vmem:[%s5907_s22 + $0x28] sm:$0xff]  }
 0x2f9   :  { %v643_v50 = vpop.f32.mrb[10].mxu1 }
 0x2fa   :  { %v748_v51 = vadd.f32 %v643_v50, %v543_v46  ;;  %v5312_v52 = vpop.f32.mrb[11].mxu1  ;;  %v761_v53 = vpack.c.bf16 %v758_v49, %v757_v47  ;;  %v755_v54 = vmul.f32 0.2, %v5309_v48  ;;  %v5343_v50 = vld [vmem:[%s5906_s25 + $0x8] ss:$12 sps:$4 sm:$0xff]  }
 0x2fc   :  { %v5315_v55 = vadd.f32 %v3963_v25, %v748_v51  ;;  %3980 = vmatprep.mubr.bf16.mxu1 %v761_v53  ;;  %v759_v58 = vmax.f32 %v5309_v48, %v755_v54  ;;  %v5348_v51 = vld [vmem:[%s5906_s25 + $0x20] ss:$12 sps:$4 sm:$0xff]   ;;  %v5353_v53 = vld [vmem:[%s5906_s25 + $0x38] ss:$12 sps:$4 sm:$0xff]   ;;  %v5358_v54 = vld [vmem:[%s5906_s25 + $0x50] ss:$12 sps:$4 sm:$0xff]  }
 0x2fe   :  { %v756_v56 = vmul.f32 0.2, %v5315_v55  ;;  %v1446_v57 = vpack.c.bf16 %v5315_v55, %v5309_v48 }
 0x300   :  { %v760_v59 = vmax.f32 %v5315_v55, %v756_v56  ;;  %v5363_v56 = vld [vmem:[%s5906_s25 + $0x68] ss:$12 sps:$4 sm:$0xff]  }
 0x302   :  { %v762_v60 = vpack.c.bf16 %v760_v59, %v759_v58  ;;  %v5368_v58 = vld [vmem:[%s5906_s25 + $0x80] ss:$12 sps:$4 sm:$0xff]   ;;  %v5373_v59 = vld [vmem:[%s5906_s25 + $0x98] ss:$12 sps:$4 sm:$0xff]  }
 0x304   :  { %3981 = vmatmul.mubr.bf16.vlgmr.msra.gmra.mrb[12].mxu1 %v762_v60 }
 0x305   :  { %4032 = vmatprep.mubr.msk.bf16.mxu1 %vm4992_vm0, %v5872_v1  ;;  %4017 = vmatpush3.bf16.msra.mxu1 %v5343_v50 }
 0x306   :  { %4018 = vmatprep.subr.bf16.mxu1 %v5872_v1 }
 0x309   :  { %4019 = vmatpush3.bf16.msra.mxu1 %v5348_v51 }
 0x30a   :  { %4020 = vmatprep.subr.bf16.mxu1 %v5872_v1 }
 0x30d   :  { %4021 = vmatpush3.bf16.msra.mxu1 %v5353_v53 }
 0x30e   :  { %4022 = vmatprep.subr.bf16.mxu1 %v5872_v1 }
 0x311   :  { %4023 = vmatpush3.bf16.msra.mxu1 %v5358_v54 }
 0x312   :  { %4024 = vmatprep.subr.bf16.mxu1 %v5872_v1 }
 0x315   :  { %4025 = vmatpush3.bf16.msra.mxu1 %v5363_v56 }
 0x316   :  { %4026 = vmatprep.subr.bf16.mxu1 %v5872_v1 }
 0x319   :  { %4027 = vmatpush3.bf16.msra.mxu1 %v5368_v58 }
 0x31a   :  { %4028 = vmatprep.subr.bf16.mxu1 %v5872_v1 }
 0x31d   :  { %4029 = vmatpush3.bf16.msra.mxu1 %v5373_v59 }
 0x31e   :  { %4030 = vmatprep.subr.bf16.mxu1 %v5872_v1 }
 0x3d7   :  { %v3982_v63 = vpop.f32.mrb[12].mxu1 }
 0x3d8   :  { %v861_v3 = vpop.f32.mrb[13].mxu1 }
 0x3d9   :  { %v3983_v4 = vpop.f32.mrb[14].mxu1 }
 0x3da   :  { %v877_v7 = vmax.f32 %v3982_v63, %v3983_v4  ;;  %v864_v8 = vpop.f32.mrb[15].mxu1 }
 0x3db   :  { %v876_v9 = vmax.f32 %v861_v3, %v864_v8 }
 0x3dd   :  { %v878_v10 = vmax.f32 %v876_v9, %v877_v7 }
 0x3df   :  { %v879_v11 = vrot.slane %v878_v10, 4 }
 0x3e1   :  { %v880_v12 = vmax.f32 %v878_v10, %v879_v11 }
 0x3e3   :  { %v881_v13 = vrot.slane %v880_v12, 2 }
 0x3e5   :  { %v882_v14 = vmax.f32 %v880_v12, %v881_v13 }
 0x3e7   :  { %v883_v15 = vrot.slane %v882_v14, 1 }
 0x3e9   :  { %v884_v16 = vmax.f32 %v882_v14, %v883_v15 }
 0x3eb   :  { %v886_v17 = vsub.f32 %v864_v8, %v884_v16  ;;  %v885_v18 = vsub.f32 %v861_v3, %v884_v16  ;;  %v887_v19 = vsub.f32 %v3982_v63, %v884_v16  ;;  %v888_v20 = vsub.f32 %v3983_v4, %v884_v16 }
 0x3ed   :  { %v891_v21 = vmul.f32 1.442695, %v886_v17  ;;  %v889_v22 = vmul.f32 1.442695, %v885_v18  ;;  %v893_v25 = vmul.f32 1.442695, %v887_v19 }
 0x3ee   :  { %v895_v26 = vmul.f32 1.442695, %v888_v20 }
 0x3ef   :  { %4569 = vpow2.f32 %v891_v21  ;;  %v5389_v21 = vld [vmem:[%s5906_s25 + $0x1c] ss:$12 sps:$4 sm:$0xff]  }
 0x3f0   :  { %4571 = vpow2.f32 %v889_v22  ;;  %v5404_v22 = vld [vmem:[%s5906_s25 + $0x30] ss:$12 sps:$4 sm:$0xff]  }
 0x3f1   :  { %4573 = vpow2.f32 %v893_v25  ;;  %v5408_v25 = vld [vmem:[%s5906_s25 + $0x4c] ss:$12 sps:$4 sm:$0xff]  }
 0x3f2   :  { %4575 = vpow2.f32 %v895_v26  ;;  %v5412_v26 = vld [vmem:[%s5906_s25 + $0x48] ss:$12 sps:$4 sm:$0xff]  }
 0x3f9   :  { %v4570_v27 = vpop.eup %4569 }
 0x3fa   :  { %v4572_v28 = vpop.eup %4571 }
 0x3fb   :  { %v4574_v34 = vpop.eup %4573  ;;  %v4336_v38 = vpack.c.bf16 %v4570_v27, %v4572_v28 }
 0x3fc   :  { %v4576_v41 = vpop.eup %4575 }
 0x3fd   :  { %4337 = vmatprep.subr.bf16.mxu0 %v4336_v38  ;;  %v4340_v42 = vpack.c.bf16 %v4576_v41, %v4574_v34 }
 0x3fe   :  { %4339 = vmatpush3.bf16.msra.mxu0 %v4336_v38  ;;  %v5428_v38 = vld [vmem:[%s5906_s25 + $0x78] ss:$12 sps:$4 sm:$0xff]  }
 0x3ff   :  { %4341 = vmatprep.subr.bf16.mxu0 %v4340_v42 }
 0x402   :  { %4343 = vmatpush3.bf16.msra.mxu0 %v4340_v42  ;;  %v5436_v42 = vld [vmem:[%s5906_s25 + $0x90] ss:$12 sps:$4 sm:$0xff]  }
 0x405   :  { %3993 = vmatmul.mubr.msk.f32.vlgmr.msra.gmra.mrb[12].mxu0 %vm929_vm7, %v5328_v43 }
 0x406   :  { %3999 = vmatprep.mubr.msk.f32.mxu0 %vm546_vm6, %v5232_v29 }
 0x4d8   :  { %v3994_v46 = vpop.f32.mrb[12].mxu0 }
 0x4d9   :  { %v1002_v47 = vpop.f32.mrb[13].mxu0 }
 0x4da   :  { %v4344_v49 = vpack.c.bf16 %v3994_v46, %v1002_v47  ;;  %v5440_v46 = vld [vmem:[%s5906_s25 + $0xac] ss:$12 sps:$4 sm:$0xff]   ;;  %v5444_v47 = vld [vmem:[%s5906_s25 + $0xa8] ss:$12 sps:$4 sm:$0xff]  }
 0x4dc   :  { %4345 = vmatprep.subr.bf16.mxu0 %v4344_v49 }
 0x4dd   :  { %4347 = vmatpush3.bf16.msra.mxu0 %v4344_v49  ;;  %v5449_v49 = vld [vmem:[%s5906_s25 + $0xb0] ss:$12 sps:$4 sm:$0xff]  }
 0x4de   :  { %4031 = vmatpush3.bf16.msra.mxu1 %v5449_v49 }
 0x4e0   :  { %4000 = vmatmul.mubr.msk.f32.vlgmr.msra.gmra.mrb[14].mxu0 %vm546_vm6, %v5237_v30 }
 0x4e1   :  { %4002 = vmatprep.mubr.msk.f32.mxu0 %vm546_vm6, %v5241_v32 }
 0x4e4   :  { %4003 = vmatmul.mubr.msk.f32.gmra.mrb[16].mxu0 %vm546_vm6, %v5244_v33 }
 0x4e5   :  { %4013 = vmatprep.mubr.msk.f32.mxu0 %vm929_vm7, %v5324_v61 }
 0x5b3   :  { %v4001_v60 = vpop.f32.mrb[14].mxu0 }
 0x5b4   :  { %4577 = vrcp.f32 %v4001_v60  ;;  %v1077_v63 = vpop.f32.mrb[15].mxu0  ;;  %v5452_v60 = vld [vmem:[%s5907_s22] sm:$0xff]  }
 0x5b5   :  { %4579 = vrcp.f32 %v1077_v63 }
 0x5b7   :  { %v4004_v3 = vpop.f32.mrb[16].mxu0 }
 0x5b8   :  { %4581 = vrcp.f32 %v4004_v3  ;;  %v1087_v4 = vpop.f32.mrb[17].mxu0 }
 0x5b9   :  { %4583 = vrcp.f32 %v1087_v4 }
 0x5be   :  { %v4578_v7 = vpop.eup %4577 }
 0x5bf   :  { %v4580_v8 = vpop.eup %4579  ;;  %v1101_v9 = vmul.f32 %v4578_v7, %v4570_v27  ;;  %v5416_v27 = vld [vmem:[%s5906_s25 + $0x64] ss:$12 sps:$4 sm:$0xff]   ;;  %v5457_v7 = vld [vmem:[%s5907_s22 + $0x8] sm:$0xff]  }
 0x5c0   :  { %v1100_v10 = vmul.f32 %v4580_v8, %v4572_v28  ;;  %v5420_v28 = vld [vmem:[%s5906_s25 + $0x60] ss:$12 sps:$4 sm:$0xff]   ;;  %v5465_v8 = vld [vmem:[%s5907_s22 + $0x10] sm:$0xff]  }
 0x5c1   :  { %v1105_v11 = vmul.f32 %v1101_v9, %v5298_v31  ;;  %v5382_v31 = vld [vmem:[%s5906_s25 + $0x4] ss:$12 sps:$4 sm:$0xff]   ;;  %v5471_v9 = vld [vmem:[%s5907_s22 + $0x18] sm:$0xff]  }
 0x5c2   :  { %v4582_v12 = vpop.eup %4581  ;;  %v1104_v13 = vmul.f32 %v1100_v10, %v5294_v23  ;;  %v5385_v23 = vld [vmem:[%s5906_s25] ss:$12 sps:$4 sm:$0xff]   ;;  %v5491_v10 = vld [vmem:[%s5907_s22 + $0x38] sm:$0xff]  }
 0x5c3   :  { %v4584_v14 = vpop.eup %4583  ;;  %v1103_v15 = vmul.f32 %v4582_v12, %v4576_v41  ;;  %v5432_v41 = vld [vmem:[%s5906_s25 + $0x94] ss:$12 sps:$4 sm:$0xff]  }
 0x5c4   :  { %v4348_v16 = vpack.c.bf16 %v1105_v11, %v1104_v13  ;;  %v1102_v17 = vmul.f32 %v4584_v14, %v4574_v34  ;;  %v5424_v34 = vld [vmem:[%s5906_s25 + $0x7c] ss:$12 sps:$4 sm:$0xff]  }
 0x5c5   :  { %v1107_v18 = vmul.f32 %v1103_v15, %v5312_v52  ;;  %v5400_v52 = vld [vmem:[%s5906_s25 + $0x34] ss:$12 sps:$4 sm:$0xff]   ;;  %v1216_v11 = vld [vmem:[#allocation16] sm:$0x7] }
 0x5c6   :  { %4349 = vmatprep.subr.bf16.mxu0 %v4348_v16  ;;  %v1106_v19 = vmul.f32 %v1102_v17, %v5304_v44  ;;  %v5395_v44 = vld [vmem:[%s5906_s25 + $0x18] ss:$12 sps:$4 sm:$0xff]   ;;  %v5503_v12 = vrot.slane %v1216_v11, %v330_v37  ;;  %v5507_v13 = vrot.slane %v1216_v11, %v338_v36  ;;  %v5511_v14 = vrot.slane %v1216_v11, %v334_v39 }
 0x5c7   :  { %4351 = vmatpush3.bf16.msra.mxu0 %v4348_v16 }
 0x5c8   :  { %v4352_v20 = vpack.c.bf16 %v1107_v18, %v1106_v19  ;;  %5908 = vst [vmem:[#allocation49_spill] sm:$0xff] %v5503_v12  ;;  %5909 = vst [vmem:[#allocation50_spill] sm:$0xff] %v5507_v13 }
 0x5c9   :  { %5910 = vst [vmem:[#allocation51_spill] sm:$0xff] %v5511_v14 }
 0x5ca   :  { %4353 = vmatprep.subr.bf16.mxu0 %v4352_v20 }
 0x5cb   :  { %4355 = vmatpush3.bf16.msra.mxu0 %v4352_v20 }
 0x5cc   :  { %1361 = vmatprep.subr.bf16.mxu0 %v5382_v31 }
 0x5ce   :  { %4014 = vmatmul.mubr.msk.f32.vlgmr.msra.gmra.mrb[18].mxu0 %vm929_vm7, %v5328_v43 }
 0x5cf   :  { %1362 = vmatpush1.bf16.msra.mxu0 %v5385_v23  ;;  %1393 = vmatprep.mubr.bf16.mxu0 %v5861_v2 }
 0x5d0   :  { %1363 = vmatprep.subr.bf16.mxu0 %v5389_v21 }
 0x5d3   :  { %1364 = vmatpush1.bf16.msra.mxu0 %v5395_v44 }
 0x5d4   :  { %1365 = vmatprep.subr.bf16.mxu0 %v5400_v52 }
 0x5d7   :  { %1366 = vmatpush1.bf16.msra.mxu0 %v5404_v22 }
 0x5d8   :  { %1367 = vmatprep.subr.bf16.mxu0 %v5408_v25 }
 0x5db   :  { %1368 = vmatpush1.bf16.msra.mxu0 %v5412_v26 }
 0x5dc   :  { %1369 = vmatprep.subr.bf16.mxu0 %v5416_v27 }
 0x5df   :  { %1370 = vmatpush1.bf16.msra.mxu0 %v5420_v28 }
 0x5e0   :  { %1371 = vmatprep.subr.bf16.mxu0 %v5424_v34 }
 0x5e3   :  { %1372 = vmatpush1.bf16.msra.mxu0 %v5428_v38 }
 0x5e4   :  { %1373 = vmatprep.subr.bf16.mxu0 %v5432_v41 }
 0x5e7   :  { %1374 = vmatpush1.bf16.msra.mxu0 %v5436_v42 }
 0x5e8   :  { %1375 = vmatprep.subr.bf16.mxu0 %v5440_v46 }
 0x5eb   :  { %1376 = vmatpush1.bf16.msra.mxu0 %v5444_v47 }
 0x5ec   :  { %4036 = vmatprep.subr.bf16.mxu0 %v5452_v60 }
 0x6a1   :  { %v4015_v63 = vpop.f32.mrb[18].mxu0 }
 0x6a2   :  { %v1174_v3 = vpop.f32.mrb[19].mxu0 }
 0x6a3   :  { %v1183_v4 = vpack.c.bf16 %v4015_v63, %v1174_v3 }
 0x6a5   :  { %1394 = vmatmul.mubr.bf16.vlgmr.msra.gmra.mrb[20].mxu0 %v1183_v4  ;;  %4033 = vmatmul.mubr.bf16.vlgmr.msra.gmra.mrb[16].mxu1 %v1183_v4 }
 0x6a6   :  { %4037 = vmatpush3.bf16.msra.mxu0 %v5452_v60  ;;  %4052 = vmatprep.mubr.bf16.mxu0 %v1445_v45  ;;  %v5486_v45 = vld [vmem:[%s5907_s22 + $0x30] sm:$0xff]  }
 0x6a7   :  { %4038 = vmatprep.subr.bf16.mxu0 %v5457_v7  ;;  %1631 = vmatprep.mubr.f32.mxu1 %v5872_v1 }
 0x6aa   :  { %4039 = vmatpush3.bf16.msra.mxu0 %v5457_v7 }
 0x6ab   :  { %4040 = vmatprep.subr.bf16.mxu0 %v5465_v8 }
 0x6ae   :  { %4041 = vmatpush3.bf16.msra.mxu0 %v5465_v8 }
 0x6af   :  { %4042 = vmatprep.subr.bf16.mxu0 %v5471_v9 }
 0x6b2   :  { %4043 = vmatpush3.bf16.msra.mxu0 %v5471_v9 }
 0x6b3   :  { %4044 = vmatprep.subr.bf16.mxu0 %v5476_v24 }
 0x6b6   :  { %4045 = vmatpush3.bf16.msra.mxu0 %v5476_v24 }
 0x6b7   :  { %4046 = vmatprep.subr.bf16.mxu0 %v5481_v40 }
 0x6ba   :  { %4047 = vmatpush3.bf16.msra.mxu0 %v5481_v40 }
 0x6bb   :  { %4048 = vmatprep.subr.bf16.mxu0 %v5486_v45 }
 0x6be   :  { %4049 = vmatpush3.bf16.msra.mxu0 %v5486_v45 }
 0x6bf   :  { %4050 = vmatprep.subr.bf16.mxu0 %v5491_v10 }
 0x6c2   :  { %4051 = vmatpush3.bf16.msra.mxu0 %v5491_v10 }
 0x6c5   :  { %4053 = vmatmul.mubr.bf16.vlgmr.msra.gmra.mrb[24].mxu0 %v1446_v57 }
 0x6c6   :  { %4094 = vmatprep.mubr.msk.f32.mxu0 %vm929_vm7, %v5324_v61 }
 0x778   :  { %v1395_v15 = vpop.f32.mrb[20].mxu0  ;;  %v1438_v16 = vpop.f32.mrb[16].mxu1 }
 0x779   :  { %v1397_v48 = vpop.f32.mrb[21].mxu0  ;;  %v4034_v55 = vpop.f32.mrb[17].mxu1  ;;  %v1396_v18 = vadd.f32 %v1395_v15, %v5503_v12  ;;  %v1439_v37 = vadd.f32 %v1438_v16, %v5507_v13 }
 0x77a   :  { %v1399_v57 = vpop.f32.mrb[22].mxu0  ;;  %v1441_v17 = vpop.f32.mrb[18].mxu1  ;;  %v1398_v35 = vadd.f32 %v1397_v48, %v5511_v14  ;;  %v5520_v55 = vld [vmem:[%s5911_s19] sm:$0xff]  }
 0x77b   :  { %v1400_v19 = vadd.f32 %v1399_v57, %v5503_v12  ;;  %v1442_v36 = vadd.f32 %v1441_v17, %v5507_v13  ;;  %v1401_v20 = vpop.f32.mrb[23].mxu0  ;;  %v4035_v63 = vpop.f32.mrb[19].mxu1  ;;  %v5544_v17 = vld [vmem:[%s5911_s19 + $0x8] sm:$0xff]  }
 0x77c   :  { %v1402_v39 = vadd.f32 %v1401_v20, %v5511_v14  ;;  %v5569_v20 = vld [vmem:[%s5911_s19 + $0x30] sm:$0xff]   ;;  %v5574_v63 = vld [vmem:[%s5911_s19 + $0x38] sm:$0xff]  }
 0x77d   :  { %v4358_v3 = vpack.c.bf16 %v1400_v19, %v1396_v18  ;;  %v4360_v4 = vpack.c.bf16 %v1442_v36, %v1439_v37  ;;  %v5549_v18 = vld [vmem:[%s5911_s19 + $0x10] sm:$0xff]   ;;  %v5554_v37 = vld [vmem:[%s5911_s19 + $0x18] sm:$0xff]   ;;  %v5559_v19 = vld [vmem:[%s5911_s19 + $0x20] sm:$0xff]   ;;  %5915 = vst [vmem:[#allocation55_spill] sm:$0xff] %v5569_v20 }
 0x77e   :  { %v4356_v11 = vpack.c.bf16 %v1402_v39, %v1398_v35  ;;  %5912 = vst [vmem:[#allocation52_spill] sm:$0xff] %v5554_v37  ;;  %5913 = vst [vmem:[#allocation53_spill] sm:$0xff] %v5559_v19  ;;  %v5564_v36 = vld [vmem:[%s5911_s19 + $0x28] sm:$0xff]  }
 0x77f   :  { %5914 = vst [vmem:[#allocation54_spill] sm:$0xff] %v5564_v36  ;;  %5916 = vst [vmem:[#allocation56_spill] sm:$0xff] %v5574_v63  ;;  %v5579_v35 = vld [vmem:[#allocation17] ss:$0 sm:$0xff] }
 0x780   :  { %4357 = vmatprep.subr.bf16.mxu1 %v4356_v11  ;;  %5917 = vst [vmem:[#allocation57_spill] sm:$0xff] %v5579_v35 }
 0x781   :  { %4359 = vmatpush1.bf16.msra.mxu1 %v4358_v3 }
 0x782   :  { %4361 = vmatprep.subr.bf16.mxu1 %v4360_v4 }
 0x784   :  { %3647 = vmatmul.mubr.msk.f32.vlgmr.msra.gmra.mrb[20].mxu1 %vm546_vm6, %v5260_v62 }
 0x785   :  { %4363 = vmatpush3.bf16.msra.mxu1 %v4360_v4  ;;  %1637 = vmatprep.mubr.f32.mxu1 %v5872_v1 }
 0x786   :  { %4066 = vmatprep.subr.bf16.mxu1 %v5520_v55 }
 0x788   :  { %3648 = vmatmul.mubr.msk.f32.gmra.mrb[22].mxu1 %vm546_vm6, %v5267_v0 }
 0x789   :  { %1643 = vmatprep.mubr.f32.mxu1 %v5872_v1 }
 0x78c   :  { %3649 = vmatmul.mubr.msk.f32.gmra.mrb[24].mxu1 %vm546_vm6, %v5278_v5 }
 0x78d   :  { %1649 = vmatprep.mubr.f32.mxu1 %v5872_v1 }
 0x790   :  { %3650 = vmatmul.mubr.msk.f32.gmra.mrb[26].mxu1 %vm546_vm6, %v5283_v6 }
 0x791   :  { %4060 = vmatprep.mubr.msk.f32.mxu1 %vm546_vm6, %v5232_v29 }
 0x794   :  { %4061 = vmatmul.mubr.msk.f32.vlgmr.msra.gmra.mrb[28].mxu1 %vm546_vm6, %v5237_v30 }
 0x795   :  { %4063 = vmatprep.mubr.msk.f32.mxu1 %vm546_vm6, %v5241_v32  ;;  %4067 = vmatpush3.bf16.msra.mxu1 %v5520_v55 }
 0x796   :  { %4068 = vmatprep.subr.bf16.mxu1 %v5544_v17 }
 0x798   :  { %v4054_v15 = vpop.f32.mrb[24].mxu0  ;;  %4064 = vmatmul.mubr.msk.f32.gmra.mrb[30].mxu1 %vm546_vm6, %v5244_v33 }
 0x799   :  { %v1552_v16 = vpop.f32.mrb[25].mxu0  ;;  %4069 = vmatpush3.bf16.msra.mxu1 %v5544_v17  ;;  %v1561_v62 = vadd.f32 %v4054_v15, %v5579_v35 }
 0x79a   :  { %v4055_v48 = vpop.f32.mrb[26].mxu0  ;;  %4070 = vmatprep.subr.bf16.mxu1 %v5549_v18  ;;  %v1553_v39 = vadd.f32 %v5579_v35, %v1552_v16 }
 0x79b   :  { %v1555_v57 = vpop.f32.mrb[27].mxu0 }
 0x79c   :  { %v1556_v2 = vadd.f32 %v5579_v35, %v1555_v57 }
 0x79d   :  { %4071 = vmatpush3.bf16.msra.mxu1 %v5549_v18 }
 0x79e   :  { %4072 = vmatprep.subr.bf16.mxu1 %v5554_v37 }
 0x7a1   :  { %4073 = vmatpush3.bf16.msra.mxu1 %v5554_v37 }
 0x7a2   :  { %4074 = vmatprep.subr.bf16.mxu1 %v5559_v19 }
 0x7a5   :  { %4075 = vmatpush3.bf16.msra.mxu1 %v5559_v19 }
 0x7a6   :  { %4076 = vmatprep.subr.bf16.mxu1 %v5564_v36 }
 0x7a9   :  { %4077 = vmatpush3.bf16.msra.mxu1 %v5564_v36 }
 0x7aa   :  { %4078 = vmatprep.subr.bf16.mxu1 %v5569_v20 }
 0x7ad   :  { %4079 = vmatpush3.bf16.msra.mxu1 %v5569_v20 }
 0x7ae   :  { %4080 = vmatprep.subr.bf16.mxu1 %v5574_v63 }
 0x7b1   :  { %4081 = vmatpush3.bf16.msra.mxu1 %v5574_v63 }
 0x7b2   :  { %4118 = vmatprep.subr.bf16.mxu1 %v5872_v1  ;;  %v1564_v1 = vadd.f32 %v4055_v48, %v5579_v35 }
 0x857   :  { %v1633_v3 = vpop.f32.mrb[20].mxu1 }
 0x858   :  { %v1741_v4 = vadd.f32 %v1633_v3, %v1553_v39  ;;  %v5582_v11 = vpop.f32.mrb[21].mxu1 }
 0x85b   :  { %v1639_v6 = vpop.f32.mrb[22].mxu1 }
 0x85c   :  { %v1742_v5 = vadd.f32 %v1639_v6, %v1556_v2  ;;  %v5585_v0 = vpop.f32.mrb[23].mxu1 }
 0x85f   :  { %v1645_v14 = vpop.f32.mrb[24].mxu1 }
 0x860   :  { %v1743_v13 = vadd.f32 %v1645_v14, %v1561_v62  ;;  %v5588_v12 = vpop.f32.mrb[25].mxu1 }
 0x863   :  { %v1651_v63 = vpop.f32.mrb[26].mxu1 }
 0x864   :  { %v1744_v16 = vadd.f32 %v1651_v63, %v1564_v1  ;;  %v5591_v20 = vpop.f32.mrb[27].mxu1 }
 0x867   :  { %v4062_v39 = vpop.f32.mrb[28].mxu1 }
 0x868   :  { %v5593_v3 = vadd.f32 %v4062_v39, %v1742_v5  ;;  %v1722_v57 = vpop.f32.mrb[29].mxu1 }
 0x869   :  { %v5595_v36 = vadd.f32 %v1741_v4, %v1722_v57 }
 0x86a   :  { %v1750_v2 = vmul.f32 0.2, %v5593_v3 }
 0x86b   :  { %v1749_v6 = vmul.f32 0.2, %v5595_v36  ;;  %v4065_v15 = vpop.f32.mrb[30].mxu1 }
 0x86c   :  { %v1754_v14 = vmax.f32 %v5593_v3, %v1750_v2  ;;  %v5602_v48 = vadd.f32 %v4065_v15, %v1744_v16  ;;  %v1732_v1 = vpop.f32.mrb[31].mxu1  ;;  %v5918_v2 = vmov 0.0  }
 0x86d   :  { %v1753_v63 = vmax.f32 %v5595_v36, %v1749_v6  ;;  %v5605_v5 = vadd.f32 %v1743_v13, %v1732_v1 }
 0x86e   :  { %v1752_v4 = vmul.f32 0.2, %v5602_v48 }
 0x86f   :  { %v1751_v39 = vmul.f32 0.2, %v5605_v5  ;;  %v1757_v35 = vpack.c.bf16 %v1754_v14, %v1753_v63 }
 0x870   :  { %v1756_v19 = vmax.f32 %v5602_v48, %v1752_v4 }
 0x871   :  { %v1755_v62 = vmax.f32 %v5605_v5, %v1751_v39  ;;  %4082 = vmatprep.mubr.bf16.mxu1 %v1757_v35 }
 0x873   :  { %v1758_v16 = vpack.c.bf16 %v1756_v19, %v1755_v62 }
 0x875   :  { %4083 = vmatmul.mubr.bf16.vlgmr.msra.gmra.mrb[32].mxu1 %v1758_v16 }
 0x876   :  { %4119 = vmatpush3.bf16.msra.mxu1 %v5343_v50  ;;  %4134 = vmatprep.mubr.msk.bf16.mxu1 %vm4992_vm0, %v5918_v2 }
 0x877   :  { %4120 = vmatprep.subr.bf16.mxu1 %v5918_v2 }
 0x87a   :  { %4121 = vmatpush3.bf16.msra.mxu1 %v5348_v51 }
 0x87b   :  { %4122 = vmatprep.subr.bf16.mxu1 %v5918_v2 }
 0x87e   :  { %4123 = vmatpush3.bf16.msra.mxu1 %v5353_v53 }
 0x87f   :  { %4124 = vmatprep.subr.bf16.mxu1 %v5918_v2 }
 0x882   :  { %4125 = vmatpush3.bf16.msra.mxu1 %v5358_v54 }
 0x883   :  { %4126 = vmatprep.subr.bf16.mxu1 %v5918_v2 }
 0x886   :  { %4127 = vmatpush3.bf16.msra.mxu1 %v5363_v56 }
 0x887   :  { %4128 = vmatprep.subr.bf16.mxu1 %v5918_v2 }
 0x88a   :  { %4129 = vmatpush3.bf16.msra.mxu1 %v5368_v58 }
 0x88b   :  { %4130 = vmatprep.subr.bf16.mxu1 %v5918_v2 }
 0x88e   :  { %4131 = vmatpush3.bf16.msra.mxu1 %v5373_v59 }
 0x88f   :  { %4132 = vmatprep.subr.bf16.mxu1 %v5918_v2 }
 0x892   :  { %4133 = vmatpush3.bf16.msra.mxu1 %v5449_v49 }
 0x948   :  { %v4084_v50 = vpop.f32.mrb[32].mxu1 }
 0x949   :  { %v1857_v51 = vpop.f32.mrb[33].mxu1 }
 0x94a   :  { %v4085_v53 = vpop.f32.mrb[34].mxu1 }
 0x94b   :  { %v1873_v54 = vmax.f32 %v4084_v50, %v4085_v53  ;;  %v1860_v13 = vpop.f32.mrb[35].mxu1 }
 0x94c   :  { %v1872_v19 = vmax.f32 %v1857_v51, %v1860_v13 }
 0x94e   :  { %v1874_v35 = vmax.f32 %v1872_v19, %v1873_v54 }
 0x950   :  { %v1875_v56 = vrot.slane %v1874_v35, 4 }
 0x952   :  { %v1876_v6 = vmax.f32 %v1874_v35, %v1875_v56 }
 0x954   :  { %v1877_v15 = vrot.slane %v1876_v6, 2 }
 0x956   :  { %v1878_v62 = vmax.f32 %v1876_v6, %v1877_v15 }
 0x958   :  { %v1879_v58 = vrot.slane %v1878_v62, 1 }
 0x95a   :  { %v1880_v14 = vmax.f32 %v1878_v62, %v1879_v58 }
 0x95c   :  { %v1882_v1 = vsub.f32 %v1860_v13, %v1880_v14  ;;  %v1881_v63 = vsub.f32 %v1857_v51, %v1880_v14  ;;  %v1883_v59 = vsub.f32 %v4084_v50, %v1880_v14  ;;  %v1884_v4 = vsub.f32 %v4085_v53, %v1880_v14 }
 0x95e   :  { %v1887_v39 = vmul.f32 1.442695, %v1882_v1  ;;  %v1885_v16 = vmul.f32 1.442695, %v1881_v63  ;;  %v1889_v49 = vmul.f32 1.442695, %v1883_v59 }
 0x95f   :  { %v1891_v57 = vmul.f32 1.442695, %v1884_v4 }
 0x960   :  { %4585 = vpow2.f32 %v1887_v39 }
 0x961   :  { %4587 = vpow2.f32 %v1885_v16 }
 0x962   :  { %4589 = vpow2.f32 %v1889_v49 }
 0x963   :  { %4591 = vpow2.f32 %v1891_v57 }
 0x96a   :  { %v4586_v37 = vpop.eup %4585 }
 0x96b   :  { %v4588_v54 = vpop.eup %4587 }
 0x96c   :  { %v4590_v19 = vpop.eup %4589  ;;  %v4364_v35 = vpack.c.bf16 %v4586_v37, %v4588_v54 }
 0x96d   :  { %v4592_v56 = vpop.eup %4591 }
 0x96e   :  { %4365 = vmatprep.subr.bf16.mxu0 %v4364_v35  ;;  %v4368_v6 = vpack.c.bf16 %v4592_v56, %v4590_v19 }
 0x96f   :  { %4367 = vmatpush3.bf16.msra.mxu0 %v4364_v35 }
 0x970   :  { %4369 = vmatprep.subr.bf16.mxu0 %v4368_v6 }
 0x973   :  { %4371 = vmatpush3.bf16.msra.mxu0 %v4368_v6 }
 0x976   :  { %4095 = vmatmul.mubr.msk.f32.vlgmr.msra.gmra.mrb[28].mxu0 %vm929_vm7, %v5328_v43 }
 0x977   :  { %4101 = vmatprep.mubr.msk.f32.mxu0 %vm546_vm6, %v5232_v29 }
 0xa49   :  { %v4096_v50 = vpop.f32.mrb[28].mxu0 }
 0xa4a   :  { %v1959_v51 = vpop.f32.mrb[29].mxu0 }
 0xa4b   :  { %v4372_v53 = vpack.c.bf16 %v4096_v50, %v1959_v51 }
 0xa4d   :  { %4373 = vmatprep.subr.bf16.mxu0 %v4372_v53 }
 0xa4e   :  { %4375 = vmatpush3.bf16.msra.mxu0 %v4372_v53 }
 0xa51   :  { %4102 = vmatmul.mubr.msk.f32.vlgmr.msra.gmra.mrb[30].mxu0 %vm546_vm6, %v5237_v30 }
 0xa52   :  { %4104 = vmatprep.mubr.msk.f32.mxu0 %vm546_vm6, %v5241_v32 }
 0xa55   :  { %4105 = vmatmul.mubr.msk.f32.gmra.mrb[32].mxu0 %vm546_vm6, %v5244_v33 }
 0xa56   :  { %4115 = vmatprep.mubr.msk.f32.mxu0 %vm929_vm7, %v5324_v61 }
 0xb24   :  { %v4103_v57 = vpop.f32.mrb[30].mxu0 }
 0xb25   :  { %4593 = vrcp.f32 %v4103_v57  ;;  %v2034_v13 = vpop.f32.mrb[31].mxu0  ;;  %v4539_v57 = vld [vmem:[%s5931_s23] sm:$0xff]  }
 0xb26   :  { %4595 = vrcp.f32 %v2034_v13  ;;  %v5935_v13 = vld [vmem:[#allocation57_spill] sm:$0xff] }
 0xb28   :  { %v4106_v15 = vpop.f32.mrb[32].mxu0 }
 0xb29   :  { %4597 = vrcp.f32 %v4106_v15  ;;  %v2044_v62 = vpop.f32.mrb[33].mxu0 }
 0xb2a   :  { %4599 = vrcp.f32 %v2044_v62 }
 0xb2f   :  { %v4594_v58 = vpop.eup %4593 }
 0xb30   :  { %v4596_v14 = vpop.eup %4595  ;;  %v2058_v1 = vmul.f32 %v4594_v58, %v4586_v37 }
 0xb31   :  { %v2057_v63 = vmul.f32 %v4596_v14, %v4588_v54 }
 0xb32   :  { %v2062_v59 = vmul.f32 %v2058_v1, %v5585_v0  ;;  %v5919_v0 = vmov 0  }
 0xb33   :  { %v4598_v4 = vpop.eup %4597  ;;  %v2061_v39 = vmul.f32 %v2057_v63, %v5582_v11  ;;  %v5932_v11 = vld [vmem:[#allocation46_spill] sm:$0xff] }
 0xb34   :  { %v4600_v16 = vpop.eup %4599  ;;  %v2060_v49 = vmul.f32 %v4598_v4, %v4592_v56 }
 0xb35   :  { %v4376_v35 = vpack.c.bf16 %v2062_v59, %v2061_v39  ;;  %v2059_v6 = vmul.f32 %v4600_v16, %v4590_v19 }
 0xb36   :  { %v2064_v50 = vmul.f32 %v2060_v49, %v5591_v20  ;;  %v5930_v20 = vld [vmem:[#allocation45_spill] sm:$0xff] }
 0xb37   :  { %4377 = vmatprep.subr.bf16.mxu0 %v4376_v35  ;;  %v2063_v51 = vmul.f32 %v2059_v6, %v5588_v12  ;;  %v5929_v12 = vld [vmem:[#allocation51_spill] sm:$0xff] }
 0xb38   :  { %4379 = vmatpush3.bf16.msra.mxu0 %v4376_v35 }
 0xb39   :  { %v4380_v53 = vpack.c.bf16 %v2064_v50, %v2063_v51 }
 0xb3b   :  { %4381 = vmatprep.subr.bf16.mxu0 %v4380_v53 }
 0xb3c   :  { %4383 = vmatpush3.bf16.msra.mxu0 %v4380_v53 }
 0xb3d   :  { %2141 = vmatprep.subr.bf16.mxu0 %v5382_v31 }
 0xb3f   :  { %4116 = vmatmul.mubr.msk.f32.vlgmr.msra.gmra.mrb[34].mxu0 %vm929_vm7, %v5328_v43 }
 0xb40   :  { %2142 = vmatpush1.bf16.msra.mxu0 %v5385_v23  ;;  %2173 = vmatprep.mubr.bf16.mxu0 %v5919_v0 }
 0xb41   :  { %2143 = vmatprep.subr.bf16.mxu0 %v5389_v21 }
 0xb44   :  { %2144 = vmatpush1.bf16.msra.mxu0 %v5395_v44  ;;  %v5920_v44 = vpack.c.bf16 %v5593_v3, %v5595_v36  ;;  %v5933_v3 = vld [vmem:[#allocation47_spill] sm:$0xff] }
 0xb45   :  { %2145 = vmatprep.subr.bf16.mxu0 %v5400_v52  ;;  %v5921_v52 = vpack.c.bf16 %v5602_v48, %v5605_v5  ;;  %v5934_v48 = vld [vmem:[#allocation48_spill] sm:$0xff] }
 0xb48   :  { %2146 = vmatpush1.bf16.msra.mxu0 %v5404_v22  ;;  %v5922_v22 = vld [vmem:[#allocation52_spill] sm:$0xff] }
 0xb49   :  { %2147 = vmatprep.subr.bf16.mxu0 %v5408_v25  ;;  %v5923_v25 = vld [vmem:[#allocation53_spill] sm:$0xff] }
 0xb4c   :  { %2148 = vmatpush1.bf16.msra.mxu0 %v5412_v26  ;;  %v5924_v26 = vld [vmem:[#allocation54_spill] sm:$0xff] }
 0xb4d   :  { %2149 = vmatprep.subr.bf16.mxu0 %v5416_v27  ;;  %v5925_v27 = vld [vmem:[#allocation55_spill] sm:$0xff] }
 0xb50   :  { %2150 = vmatpush1.bf16.msra.mxu0 %v5420_v28  ;;  %v5926_v28 = vld [vmem:[#allocation56_spill] sm:$0xff] }
 0xb51   :  { %2151 = vmatprep.subr.bf16.mxu0 %v5424_v34 }
 0xb54   :  { %2152 = vmatpush1.bf16.msra.mxu0 %v5428_v38 }
 0xb55   :  { %2153 = vmatprep.subr.bf16.mxu0 %v5432_v41 }
 0xb58   :  { %2154 = vmatpush1.bf16.msra.mxu0 %v5436_v42 }
 0xb59   :  { %2155 = vmatprep.subr.bf16.mxu0 %v5440_v46 }
 0xb5c   :  { %2156 = vmatpush1.bf16.msra.mxu0 %v5444_v47 }
 0xb5d   :  { %4138 = vmatprep.subr.bf16.mxu0 %v5452_v60 }
 0xc12   :  { %v4117_v31 = vpop.f32.mrb[34].mxu0 }
 0xc13   :  { %v2131_v23 = vpop.f32.mrb[35].mxu0 }
 0xc14   :  { %v2140_v21 = vpack.c.bf16 %v4117_v31, %v2131_v23 }
 0xc16   :  { %2174 = vmatmul.mubr.bf16.vlgmr.msra.gmra.mrb[36].mxu0 %v2140_v21  ;;  %4135 = vmatmul.mubr.bf16.vlgmr.msra.gmra.mrb[36].mxu1 %v2140_v21 }
 0xc17   :  { %4139 = vmatpush3.bf16.msra.mxu0 %v5452_v60  ;;  %4154 = vmatprep.mubr.bf16.mxu0 %v5920_v44  ;;  %v5927_v60 = vld [vmem:[#allocation49_spill] sm:$0xff] }
 0xc18   :  { %4140 = vmatprep.subr.bf16.mxu0 %v5457_v7  ;;  %2340 = vmatprep.mubr.f32.mxu1 %v5918_v2 }
 0xc1b   :  { %4141 = vmatpush3.bf16.msra.mxu0 %v5457_v7 }
 0xc1c   :  { %4142 = vmatprep.subr.bf16.mxu0 %v5465_v8 }
 0xc1f   :  { %4143 = vmatpush3.bf16.msra.mxu0 %v5465_v8  ;;  %v5928_v8 = vld [vmem:[#allocation50_spill] sm:$0xff] }
 0xc20   :  { %4144 = vmatprep.subr.bf16.mxu0 %v5471_v9 }
 0xc23   :  { %4145 = vmatpush3.bf16.msra.mxu0 %v5471_v9 }
 0xc24   :  { %4146 = vmatprep.subr.bf16.mxu0 %v5476_v24 }
 0xc27   :  { %4147 = vmatpush3.bf16.msra.mxu0 %v5476_v24 }
 0xc28   :  { %4148 = vmatprep.subr.bf16.mxu0 %v5481_v40 }
 0xc2b   :  { %4149 = vmatpush3.bf16.msra.mxu0 %v5481_v40 }
 0xc2c   :  { %4150 = vmatprep.subr.bf16.mxu0 %v5486_v45 }
 0xc2f   :  { %4151 = vmatpush3.bf16.msra.mxu0 %v5486_v45 }
 0xc30   :  { %4152 = vmatprep.subr.bf16.mxu0 %v5491_v10 }
 0xc33   :  { %4153 = vmatpush3.bf16.msra.mxu0 %v5491_v10 }
 0xc34   :  { %4168 = vmatprep.subr.bf16.mxu0 %v5520_v55 }
 0xc36   :  { %4155 = vmatmul.mubr.bf16.vlgmr.msra.gmra.mrb[40].mxu0 %v5921_v52 }
 0xc37   :  { %4169 = vmatpush3.bf16.msra.mxu0 %v5520_v55 }
 0xc38   :  { %4170 = vmatprep.subr.bf16.mxu0 %v5544_v17 }
 0xc3b   :  { %4171 = vmatpush3.bf16.msra.mxu0 %v5544_v17 }
 0xc3c   :  { %4172 = vmatprep.subr.bf16.mxu0 %v5549_v18 }
 0xc3f   :  { %4173 = vmatpush3.bf16.msra.mxu0 %v5549_v18 }
 0xc40   :  { %4174 = vmatprep.subr.bf16.mxu0 %v5922_v22 }
 0xc43   :  { %4175 = vmatpush3.bf16.msra.mxu0 %v5922_v22 }
 0xc44   :  { %4176 = vmatprep.subr.bf16.mxu0 %v5923_v25 }
 0xc47   :  { %4177 = vmatpush3.bf16.msra.mxu0 %v5923_v25 }
 0xc48   :  { %4178 = vmatprep.subr.bf16.mxu0 %v5924_v26 }
 0xc4b   :  { %4179 = vmatpush3.bf16.msra.mxu0 %v5924_v26 }
 0xc4c   :  { %4180 = vmatprep.subr.bf16.mxu0 %v5925_v27 }
 0xc4f   :  { %4181 = vmatpush3.bf16.msra.mxu0 %v5925_v27 }
 0xc50   :  { %4182 = vmatprep.subr.bf16.mxu0 %v5926_v28 }
 0xc53   :  { %4183 = vmatpush3.bf16.msra.mxu0 %v5926_v28 }
 0xc54   :  { %4240 = vmatprep.subr.bf16.mxu0 %v4539_v57 }
 0xce9   :  { %v2175_v34 = vpop.f32.mrb[36].mxu0  ;;  %v2218_v38 = vpop.f32.mrb[36].mxu1 }
 0xcea   :  { %v2177_v41 = vpop.f32.mrb[37].mxu0  ;;  %v4136_v42 = vpop.f32.mrb[37].mxu1  ;;  %v2176_v7 = vadd.f32 %v2175_v34, %v5927_v60  ;;  %v2219_v9 = vadd.f32 %v2218_v38, %v5928_v8 }
 0xceb   :  { %v2179_v46 = vpop.f32.mrb[38].mxu0  ;;  %v2221_v47 = vpop.f32.mrb[38].mxu1  ;;  %v2178_v55 = vadd.f32 %v2177_v41, %v5929_v12 }
 0xcec   :  { %v2180_v24 = vadd.f32 %v2179_v46, %v5927_v60  ;;  %v2222_v40 = vadd.f32 %v2221_v47, %v5928_v8  ;;  %v2181_v45 = vpop.f32.mrb[39].mxu0  ;;  %v4137_v10 = vpop.f32.mrb[39].mxu1 }
 0xced   :  { %v2182_v17 = vadd.f32 %v2181_v45, %v5929_v12  ;;  %v4543_v45 = vld [vmem:[%s5931_s23 + $0x20] sm:$0xff]   ;;  %v4544_v10 = vld [vmem:[%s5931_s23 + $0x28] sm:$0xff]   ;;  %v4545_v12 = vld [vmem:[%s5931_s23 + $0x30] sm:$0xff]  }
 0xcee   :  { %v4386_v18 = vpack.c.bf16 %v2180_v24, %v2176_v7  ;;  %v4388_v37 = vpack.c.bf16 %v2222_v40, %v2219_v9  ;;  %v4540_v9 = vld [vmem:[%s5931_s23 + $0x8] sm:$0xff]   ;;  %v4541_v24 = vld [vmem:[%s5931_s23 + $0x10] sm:$0xff]   ;;  %v4542_v40 = vld [vmem:[%s5931_s23 + $0x18] sm:$0xff]  }
 0xcef   :  { %v4384_v36 = vpack.c.bf16 %v2182_v17, %v2178_v55  ;;  %v4546_v55 = vld [vmem:[%s5931_s23 + $0x38] sm:$0xff]  }
 0xcf1   :  { %4385 = vmatprep.subr.bf16.mxu1 %v4384_v36 }
 0xcf2   :  { %4387 = vmatpush1.bf16.msra.mxu1 %v4386_v18 }
 0xcf3   :  { %4389 = vmatprep.subr.bf16.mxu1 %v4388_v37 }
 0xcf5   :  { %3671 = vmatmul.mubr.msk.f32.vlgmr.msra.gmra.mrb[40].mxu1 %vm546_vm6, %v5930_v20 }
 0xcf6   :  { %4391 = vmatpush3.bf16.msra.mxu1 %v4388_v37  ;;  %2346 = vmatprep.mubr.f32.mxu1 %v5918_v2 }
 0xcf9   :  { %3672 = vmatmul.mubr.msk.f32.gmra.mrb[42].mxu1 %vm546_vm6, %v5932_v11 }
 0xcfa   :  { %2352 = vmatprep.mubr.f32.mxu1 %v5918_v2 }
 0xcfd   :  { %3673 = vmatmul.mubr.msk.f32.gmra.mrb[44].mxu1 %vm546_vm6, %v5933_v3 }
 0xcfe   :  { %2358 = vmatprep.mubr.f32.mxu1 %v5918_v2 }
 0xd01   :  { %3674 = vmatmul.mubr.msk.f32.gmra.mrb[46].mxu1 %vm546_vm6, %v5934_v48 }
 0xd02   :  { %4162 = vmatprep.mubr.msk.f32.mxu1 %vm546_vm6, %v5232_v29 }
 0xd05   :  { %4163 = vmatmul.mubr.msk.f32.vlgmr.msra.gmra.mrb[48].mxu1 %vm546_vm6, %v5237_v30 }
 0xd06   :  { %4165 = vmatprep.mubr.msk.f32.mxu1 %vm546_vm6, %v5241_v32 }
 0xd09   :  { %v4156_v5 = vpop.f32.mrb[40].mxu0  ;;  %4166 = vmatmul.mubr.msk.f32.gmra.mrb[50].mxu1 %vm546_vm6, %v5244_v33 }
 0xd0a   :  { %v2261_v54 = vpop.f32.mrb[41].mxu0  ;;  %4196 = vmatprep.mubr.msk.f32.mxu1 %vm929_vm7, %v5324_v61  ;;  %v2270_v39 = vadd.f32 %v4156_v5, %v5935_v13 }
 0xd0b   :  { %v4157_v19 = vpop.f32.mrb[42].mxu0  ;;  %v2262_v15 = vadd.f32 %v5935_v13, %v2261_v54 }
 0xd0c   :  { %v2264_v56 = vpop.f32.mrb[43].mxu0  ;;  %v2273_v6 = vadd.f32 %v4157_v19, %v5935_v13 }
 0xd0d   :  { %v2265_v1 = vadd.f32 %v5935_v13, %v2264_v56 }
 0xdc8   :  { %v2342_v62 = vpop.f32.mrb[40].mxu1 }
 0xdc9   :  { %v2450_v58 = vadd.f32 %v2342_v62, %v2262_v15  ;;  %v5733_v14 = vpop.f32.mrb[41].mxu1 }
 0xdcc   :  { %v2348_v63 = vpop.f32.mrb[42].mxu1 }
 0xdcd   :  { %v2451_v59 = vadd.f32 %v2348_v63, %v2265_v1  ;;  %v5736_v4 = vpop.f32.mrb[43].mxu1 }
 0xdd0   :  { %v2354_v16 = vpop.f32.mrb[44].mxu1 }
 0xdd1   :  { %v2452_v49 = vadd.f32 %v2354_v16, %v2270_v39  ;;  %v5739_v35 = vpop.f32.mrb[45].mxu1 }
 0xdd4   :  { %v2360_v50 = vpop.f32.mrb[46].mxu1 }
 0xdd5   :  { %v2453_v51 = vadd.f32 %v2360_v50, %v2273_v6  ;;  %v5742_v53 = vpop.f32.mrb[47].mxu1 }
 0xdd8   :  { %v4164_v0 = vpop.f32.mrb[48].mxu1 }
 0xdd9   :  { %v2455_v31 = vadd.f32 %v4164_v0, %v2451_v59  ;;  %v2431_v23 = vpop.f32.mrb[49].mxu1 }
 0xdda   :  { %v2454_v21 = vadd.f32 %v2450_v58, %v2431_v23 }
 0xddb   :  { %v2459_v44 = vmul.f32 0.2, %v2455_v31 }
 0xddc   :  { %v2458_v52 = vmul.f32 0.2, %v2454_v21  ;;  %v4167_v22 = vpop.f32.mrb[50].mxu1  ;;  %v2898_v25 = vpack.c.bf16 %v2455_v31, %v2454_v21 }
 0xddd   :  { %v2463_v26 = vmax.f32 %v2455_v31, %v2459_v44  ;;  %v2457_v27 = vadd.f32 %v4167_v22, %v2453_v51  ;;  %v2441_v28 = vpop.f32.mrb[51].mxu1 }
 0xdde   :  { %v2462_v34 = vmax.f32 %v2454_v21, %v2458_v52  ;;  %v2456_v38 = vadd.f32 %v2452_v49, %v2441_v28  ;;  %v3696_v49 = vld [vmem:[#allocation20] ss:$0 sm:$0xff] }
 0xddf   :  { %v2461_v41 = vmul.f32 0.2, %v2457_v27 }
 0xde0   :  { %v2460_v42 = vmul.f32 0.2, %v2456_v38  ;;  %v2899_v46 = vpack.c.bf16 %v2457_v27, %v2456_v38  ;;  %v2466_v47 = vpack.c.bf16 %v2463_v26, %v2462_v34 }
 0xde1   :  { %v2465_v60 = vmax.f32 %v2457_v27, %v2461_v41 }
 0xde2   :  { %v2464_v7 = vmax.f32 %v2456_v38, %v2460_v42  ;;  %4184 = vmatprep.mubr.bf16.mxu0 %v2466_v47 }
 0xde4   :  { %v2467_v8 = vpack.c.bf16 %v2465_v60, %v2464_v7 }
 0xde6   :  { %4185 = vmatmul.mubr.bf16.vlgmr.msra.gmra.mrb[44].mxu0 %v2467_v8 }
 0xde7   :  { %4241 = vmatpush3.bf16.msra.mxu0 %v4539_v57  ;;  %4256 = vmatprep.mubr.bf16.mxu0 %v2898_v25 }
 0xde8   :  { %4242 = vmatprep.subr.bf16.mxu0 %v4540_v9 }
 0xdeb   :  { %4243 = vmatpush3.bf16.msra.mxu0 %v4540_v9 }
 0xdec   :  { %4244 = vmatprep.subr.bf16.mxu0 %v4541_v24 }
 0xdef   :  { %4245 = vmatpush3.bf16.msra.mxu0 %v4541_v24 }
 0xdf0   :  { %4246 = vmatprep.subr.bf16.mxu0 %v4542_v40 }
 0xdf3   :  { %4247 = vmatpush3.bf16.msra.mxu0 %v4542_v40 }
 0xdf4   :  { %4248 = vmatprep.subr.bf16.mxu0 %v4543_v45 }
 0xdf7   :  { %4249 = vmatpush3.bf16.msra.mxu0 %v4543_v45 }
 0xdf8   :  { %4250 = vmatprep.subr.bf16.mxu0 %v4544_v10 }
 0xdfb   :  { %4251 = vmatpush3.bf16.msra.mxu0 %v4544_v10 }
 0xdfc   :  { %4252 = vmatprep.subr.bf16.mxu0 %v4545_v12 }
 0xdff   :  { %4253 = vmatpush3.bf16.msra.mxu0 %v4545_v12 }
 0xe00   :  { %4254 = vmatprep.subr.bf16.mxu0 %v4546_v55 }
 0xe03   :  { %4255 = vmatpush3.bf16.msra.mxu0 %v4546_v55 }
 0xe04   :  { %4278 = vmatprep.subr.bf16.mxu0 %v5918_v2 }
 0xe06   :  { %4257 = vmatmul.mubr.bf16.vlgmr.msra.gmra.mrb[48].mxu0 %v2899_v46 }
 0xe07   :  { %4286 = vmatprep.mubr.msk.bf16.mxu0 %vm4992_vm0, %v5918_v2 }
 0xeb9   :  { %v4186_v17 = vpop.f32.mrb[44].mxu0 }
 0xeba   :  { %v2502_v18 = vpop.f32.mrb[45].mxu0 }
 0xebb   :  { %v4187_v37 = vpop.f32.mrb[46].mxu0 }
 0xebc   :  { %v2518_v36 = vmax.f32 %v4186_v17, %v4187_v37  ;;  %v2505_v20 = vpop.f32.mrb[47].mxu0 }
 0xebd   :  { %v2517_v11 = vmax.f32 %v2502_v18, %v2505_v20 }
 0xebf   :  { %v2519_v3 = vmax.f32 %v2517_v11, %v2518_v36  ;;  %v4554_v36 = vld [vmem:[%s5936_s13 + $0x38] sm:$0xff]  }
 0xec1   :  { %v2520_v48 = vrot.slane %v2519_v3, 4 }
 0xec3   :  { %v2521_v5 = vmax.f32 %v2519_v3, %v2520_v48  ;;  %v4994_v48 = vmov 0.0|0.0  }
 0xec5   :  { %v2522_v54 = vrot.slane %v2521_v5, 2 }
 0xec7   :  { %v2523_v19 = vmax.f32 %v2521_v5, %v2522_v54  ;;  %v4557_v5 = vld [vmem:[#allocation23] sm:$0xff]   ;;  %v4559_v54 = vld [vmem:[#allocation23 + $0x8] sm:$0xff]  }
 0xec8   :  { %4279 = vmatpush3.bf16.msra.mxu0 %v4557_v5 }
 0xec9   :  { %v2524_v56 = vrot.slane %v2523_v19, 1  ;;  %4280 = vmatprep.subr.bf16.mxu0 %v5918_v2 }
 0xecb   :  { %v2525_v57 = vmax.f32 %v2523_v19, %v2524_v56  ;;  %v3687_v19 = vld [vmem:[#allocation19] ss:$0 sm:$0xff] }
 0xecc   :  { %4281 = vmatpush3.bf16.msra.mxu0 %v4559_v54 }
 0xecd   :  { %v2527_v13 = vsub.f32 %v2505_v20, %v2525_v57  ;;  %v2526_v15 = vsub.f32 %v2502_v18, %v2525_v57  ;;  %v2528_v62 = vsub.f32 %v4186_v17, %v2525_v57  ;;  %v2529_v58 = vsub.f32 %v4187_v37, %v2525_v57  ;;  %v4551_v18 = vld [vmem:[%s5936_s13 + $0x20] sm:$0xff]   ;;  %v4553_v37 = vld [vmem:[%s5936_s13 + $0x30] sm:$0xff]   ;;  %4282 = vmatprep.subr.bf16.mxu0 %v5918_v2 }
 0xecf   :  { %v2532_v1 = vmul.f32 1.442695, %v2527_v13  ;;  %v2530_v63 = vmul.f32 1.442695, %v2526_v15  ;;  %v2534_v59 = vmul.f32 1.442695, %v2528_v62 }
 0xed0   :  { %v2536_v39 = vmul.f32 1.442695, %v2529_v58 }
 0xed1   :  { %4601 = vpow2.f32 %v2532_v1  ;;  %v3020_v1 = vld [vmem:[#allocation7] sm:$0x1] }
 0xed2   :  { %4603 = vpow2.f32 %v2530_v63 }
 0xed3   :  { %4605 = vpow2.f32 %v2534_v59  ;;  %v3021_v59 = vunpack.c.l.bf16 %v3020_v1 }
 0xed4   :  { %4607 = vpow2.f32 %v2536_v39  ;;  %v3095_v39 = vld [vmem:[#allocation8] sm:$0x1] }
 0xed9   :  { %v4258_v16 = vpop.f32.mrb[48].mxu0 }
 0xeda   :  { %v3005_v6 = vpop.f32.mrb[49].mxu0  ;;  %v5754_v31 = vadd.f32 %v4258_v16, %v3696_v49  ;;  %v3096_v16 = vunpack.c.l.bf16 %v3095_v39 }
 0xedb   :  { %v4602_v50 = vpop.eup %4601  ;;  %v4259_v51 = vpop.f32.mrb[50].mxu0  ;;  %v5758_v52 = vadd.f32 %v3696_v49, %v3005_v6  ;;  %v4556_v6 = vld [vmem:[#allocation22 + $0x8] sm:$0xff]  }
 0xedc   :  { %v4604_v0 = vpop.eup %4603  ;;  %v5756_v23 = vadd.f32 %v4259_v51, %v3696_v49  ;;  %v3008_v21 = vpop.f32.mrb[51].mxu0  ;;  %v4560_v51 = vld [vmem:[#allocation22 + $0x18] sm:$0xff]  }
 0xedd   :  { %v4606_v44 = vpop.eup %4605  ;;  %v5760_v22 = vadd.f32 %v3696_v49, %v3008_v21  ;;  %v4392_v25 = vpack.c.bf16 %v4602_v50, %v4604_v0  ;;  %v4555_v49 = vld [vmem:[#allocation22] sm:$0xff]  }
 0xede   :  { %v4608_v26 = vpop.eup %4607  ;;  %v4419_v27 = vpack.c.bf16 %v5756_v23, %v5754_v31  ;;  %v4562_v31 = vld [vmem:[#allocation23 + $0x18] sm:$0xff]  }
 0xedf   :  { %v4416_v28 = vpack.c.bf16 %v5760_v22, %v5758_v52  ;;  %4393 = vmatprep.subr.bf16.mxu1 %v4392_v25  ;;  %v4396_v34 = vpack.c.bf16 %v4608_v26, %v4606_v44  ;;  %v3325_v52 = vld [vmem:[%s5937_s3] sm:$0xf] }
 0xee0   :  { %4395 = vmatpush3.bf16.msra.mxu1 %v4392_v25 }
 0xee1   :  { %4397 = vmatprep.subr.bf16.mxu1 %v4396_v34 }
 0xee4   :  { %4399 = vmatpush3.bf16.msra.mxu1 %v4396_v34 }
 0xee7   :  { %4197 = vmatmul.mubr.msk.f32.vlgmr.msra.gmra.mrb[52].mxu1 %vm929_vm7, %v5328_v43 }
 0xee8   :  { %4203 = vmatprep.mubr.msk.f32.mxu1 %vm546_vm6, %v5232_v29 }
 0xfba   :  { %v4198_v38 = vpop.f32.mrb[52].mxu1 }
 0xfbb   :  { %v2604_v41 = vpop.f32.mrb[53].mxu1 }
 0xfbc   :  { %v4400_v42 = vpack.c.bf16 %v4198_v38, %v2604_v41  ;;  %v4563_v38 = vld [vmem:[%s5938_s26] sm:$0xff]   ;;  %v4564_v41 = vld [vmem:[%s5938_s26 + $0x8] sm:$0xff]  }
 0xfbe   :  { %4401 = vmatprep.subr.bf16.mxu1 %v4400_v42 }
 0xfbf   :  { %4403 = vmatpush3.bf16.msra.mxu1 %v4400_v42  ;;  %v4565_v42 = vld [vmem:[%s5938_s26 + $0x10] sm:$0xff]  }
 0xfc2   :  { %4204 = vmatmul.mubr.msk.f32.vlgmr.msra.gmra.mrb[54].mxu1 %vm546_vm6, %v5237_v30 }
 0xfc3   :  { %4206 = vmatprep.mubr.msk.f32.mxu1 %vm546_vm6, %v5241_v32 }
 0xfc6   :  { %4207 = vmatmul.mubr.msk.f32.gmra.mrb[56].mxu1 %vm546_vm6, %v5244_v33 }
 0xfc7   :  { %4217 = vmatprep.mubr.msk.f32.mxu1 %vm929_vm7, %v5324_v61 }
0x1095   :  { %v4205_v46 = vpop.f32.mrb[54].mxu1 }
0x1096   :  { %4609 = vrcp.f32 %v4205_v46  ;;  %v2679_v29 = vpop.f32.mrb[55].mxu1  ;;  %v4566_v46 = vld [vmem:[%s5938_s26 + $0x18] sm:$0xff]  }
0x1097   :  { %4611 = vrcp.f32 %v2679_v29 }
0x1099   :  { %v4208_v47 = vpop.f32.mrb[56].mxu1 }
0x109a   :  { %4613 = vrcp.f32 %v4208_v47  ;;  %v2689_v60 = vpop.f32.mrb[57].mxu1 }
0x109b   :  { %4615 = vrcp.f32 %v2689_v60 }
0x10a0   :  { %v4610_v7 = vpop.eup %4609 }
0x10a1   :  { %v4612_v8 = vpop.eup %4611  ;;  %v2703_v30 = vmul.f32 %v4610_v7, %v4602_v50  ;;  %v4558_v50 = vld [vmem:[#allocation22 + $0x10] sm:$0xff]  }
0x10a2   :  { %v2702_v9 = vmul.f32 %v4612_v8, %v4604_v0  ;;  %v4561_v0 = vld [vmem:[#allocation23 + $0x10] sm:$0xff]  }
0x10a3   :  { %v2707_v32 = vmul.f32 %v2703_v30, %v5736_v4  ;;  %v4547_v4 = vld [vmem:[%s5936_s13] sm:$0xff]   ;;  %4283 = vmatpush3.bf16.msra.mxu0 %v4561_v0 }
0x10a4   :  { %v4614_v24 = vpop.eup %4613  ;;  %v2706_v33 = vmul.f32 %v2702_v9, %v5733_v14  ;;  %v4548_v14 = vld [vmem:[%s5936_s13 + $0x8] sm:$0xff]   ;;  %4284 = vmatprep.subr.bf16.mxu0 %v5918_v2 }
0x10a5   :  { %v4616_v61 = vpop.eup %4615  ;;  %v2705_v40 = vmul.f32 %v4614_v24, %v4608_v26 }
0x10a6   :  { %v4404_v45 = vpack.c.bf16 %v2707_v32, %v2706_v33  ;;  %v2704_v10 = vmul.f32 %v4616_v61, %v4606_v44  ;;  %v3718_v61 = vld [vmem:[%s5939_s20] ss:$0 sm:$0xff] }
0x10a7   :  { %v2709_v12 = vmul.f32 %v2705_v40, %v5742_v53  ;;  %v4550_v53 = vld [vmem:[%s5936_s13 + $0x18] sm:$0xff]   ;;  %4285 = vmatpush3.bf16.msra.mxu0 %v4562_v31 }
0x10a8   :  { %4405 = vmatprep.subr.bf16.mxu1 %v4404_v45  ;;  %v2708_v55 = vmul.f32 %v2704_v10, %v5739_v35  ;;  %v4549_v35 = vld [vmem:[%s5936_s13 + $0x10] sm:$0xff]   ;;  %4302 = vmatprep.subr.bf16.mxu0 %v5918_v2 }
0x10a9   :  { %4407 = vmatpush3.bf16.msra.mxu1 %v4404_v45 }
0x10aa   :  { %v4408_v17 = vpack.c.bf16 %v2709_v12, %v2708_v55 }
0x10ac   :  { %4409 = vmatprep.subr.bf16.mxu1 %v4408_v17 }
0x10ad   :  { %4411 = vmatpush3.bf16.msra.mxu1 %v4408_v17 }
0x10ae   :  { %4220 = vmatprep.subr.bf16.mxu1 %v5918_v2 }
0x10b0   :  { %4218 = vmatmul.mubr.msk.f32.vlgmr.msra.gmra.mrb[58].mxu1 %vm929_vm7, %v5328_v43  ;;  %v4552_v43 = vld [vmem:[%s5936_s13 + $0x28] sm:$0xff]  }
0x10b1   :  { %4221 = vmatpush3.bf16.msra.mxu1 %v4547_v4  ;;  %4236 = vmatprep.mubr.msk.bf16.mxu1 %vm4992_vm0, %v5918_v2 }
0x10b2   :  { %4222 = vmatprep.subr.bf16.mxu1 %v5918_v2 }
0x10b5   :  { %4223 = vmatpush3.bf16.msra.mxu1 %v4548_v14  ;;  %v4567_v14 = vld [vmem:[%s5138_s30] sm:$0xff]  }
0x10b6   :  { %4224 = vmatprep.subr.bf16.mxu1 %v5918_v2 }
0x10b9   :  { %4225 = vmatpush3.bf16.msra.mxu1 %v4549_v35  ;;  %v4568_v35 = vld [vmem:[%s5138_s30 + $0x8] sm:$0xff]  }
0x10ba   :  { %4226 = vmatprep.subr.bf16.mxu1 %v5918_v2 }
0x10bd   :  { %4227 = vmatpush3.bf16.msra.mxu1 %v4550_v53  ;;  %v3719_v53 = vld [vmem:[%s5133_s9] ss:$0 sm:$0xff] }
0x10be   :  { %4228 = vmatprep.subr.bf16.mxu1 %v5918_v2 }
0x10c1   :  { %4229 = vmatpush3.bf16.msra.mxu1 %v4551_v18 }
0x10c2   :  { %4230 = vmatprep.subr.bf16.mxu1 %v5918_v2 }
0x10c5   :  { %4231 = vmatpush3.bf16.msra.mxu1 %v4552_v43 }
0x10c6   :  { %4232 = vmatprep.subr.bf16.mxu1 %v5918_v2 }
0x10c9   :  { %4233 = vmatpush3.bf16.msra.mxu1 %v4553_v37 }
0x10ca   :  { %4234 = vmatprep.subr.bf16.mxu1 %v5918_v2 }
0x10cd   :  { %4235 = vmatpush3.bf16.msra.mxu1 %v4554_v36 }
0x10ce   :  { %4412 = vmatprep.subr.bf16.mxu1 %v4994_v48 }
0x1183   :  { %v4219_v20 = vpop.f32.mrb[58].mxu1 }
0x1184   :  { %v2776_v11 = vpop.f32.mrb[59].mxu1 }
0x1185   :  { %v2785_v3 = vpack.c.bf16 %v4219_v20, %v2776_v11 }
0x1187   :  { %4237 = vmatmul.mubr.bf16.vlgmr.msra.gmra.mrb[60].mxu1 %v2785_v3 }
0x1188   :  { %4264 = vmatprep.mubr.msk.f32.mxu1 %vm4992_vm0, %v5918_v2 }
0x125a   :  { %v2891_v56 = vpop.f32.mrb[60].mxu1 }
0x125b   :  { %v4238_v57 = vpop.f32.mrb[61].mxu1  ;;  %v2892_v15 = vadd.f32 %v3687_v19, %v2891_v56 }
0x125c   :  { %v2894_v13 = vpop.f32.mrb[62].mxu1 }
0x125d   :  { %v2895_v62 = vadd.f32 %v3687_v19, %v2894_v13  ;;  %v4239_v58 = vpop.f32.mrb[63].mxu1 }
0x125f   :  { %v4413_v63 = vpack.c.bf16 %v2895_v62, %v2892_v15 }
0x1261   :  { %4414 = vmatpush3.bf16.msra.mxu1 %v4413_v63 }
0x1262   :  { %4415 = vmatprep.subr.bf16.mxu1 %v4994_v48 }
0x1264   :  { %4265 = vmatmul.mubr.msk.f32.vlgmr.msra.gmra.mrb[64].mxu1 %vm546_vm6, %v3021_v59 }
0x1265   :  { %4417 = vmatpush3.bf16.msra.mxu1 %v4416_v28  ;;  %4275 = vmatprep.mubr.msk.f32.mxu1 %vm4992_vm0, %v5918_v2  ;;  %v3323_v28 = vld [vmem:[#allocation5] sm:$0x3] }
0x1266   :  { %4418 = vmatprep.subr.bf16.mxu1 %v4994_v48  ;;  %v3324_v34 = vpack.c.bf16 %v3323_v28, %v3323_v28  ;;  %v3725_v48 = vld [vmem:[#allocation2] ss:$0 sm:$0xff] }
0x1269   :  { %4420 = vmatpush3.bf16.msra.mxu1 %v4419_v27  ;;  %v3332_v27 = vsel %vm3330_vm9, %v3325_v52, 0 }
0x126a   :  { %4290 = vmatprep.subr.bf16.mxu1 %v5918_v2 }
0x126c   :  { %4276 = vmatmul.mubr.msk.f32.vlgmr.msra.gmra.mrb[66].mxu1 %vm929_vm7, %v3096_v16 }
0x126d   :  { %4291 = vmatpush3.bf16.msra.mxu1 %v4555_v49  ;;  %4298 = vmatprep.mubr.msk.bf16.mxu1 %vm4992_vm0, %v5918_v2 }
0x126e   :  { %4292 = vmatprep.subr.bf16.mxu1 %v5918_v2 }
0x1271   :  { %4293 = vmatpush3.bf16.msra.mxu1 %v4556_v6 }
0x1272   :  { %4294 = vmatprep.subr.bf16.mxu1 %v5918_v2 }
0x1275   :  { %4295 = vmatpush3.bf16.msra.mxu1 %v4558_v50 }
0x1276   :  { %4296 = vmatprep.subr.bf16.mxu1 %v5918_v2 }
0x1279   :  { %4297 = vmatpush3.bf16.msra.mxu1 %v4560_v51 }
0x127a   :  { %4308 = vmatprep.subr.bf16.mxu1 %v5918_v2 }
0x1337   :  { %v3091_v23 = vpop.f32.mrb[64].mxu1 }
0x1338   :  { %v3170_v21 = vpack.c.bf16 %v3091_v23, %v3091_v23  ;;  %v4266_v44 = vpop.f32.mrb[65].mxu1 }
0x133a   :  { %4299 = vmatmul.mubr.msk.bf16.vlgmr.msra.gmra.mrb[68].mxu1 %vm3212_vm8, %v3170_v21 }
0x133b   :  { %4316 = vmatprep.mubr.msk.bf16.mxu1 %vm4992_vm0, %v5918_v2  ;;  %4309 = vmatpush3.bf16.msra.mxu1 %v4563_v38 }
0x133c   :  { %4310 = vmatprep.subr.bf16.mxu1 %v5918_v2 }
0x133f   :  { %v3166_v22 = vpop.f32.mrb[66].mxu1  ;;  %4311 = vmatpush3.bf16.msra.mxu1 %v4564_v41 }
0x1340   :  { %v3179_v25 = vpack.c.bf16 %v3166_v22, %v3166_v22  ;;  %v4277_v26 = vpop.f32.mrb[67].mxu1  ;;  %4312 = vmatprep.subr.bf16.mxu1 %v5918_v2 }
0x1342   :  { %4287 = vmatmul.mubr.msk.bf16.vlgmr.msra.gmra.mrb[52].mxu0 %vm3212_vm8, %v3179_v25 }
0x1343   :  { %4303 = vmatpush3.bf16.msra.mxu0 %v3332_v27  ;;  %4304 = vmatprep.mubr.msk.bf16.mxu0 %vm4992_vm0, %v5918_v2 }
0x1344   :  { %4320 = vmatprep.subr.bf16.mxu0 %v5918_v2  ;;  %4313 = vmatpush3.bf16.msra.mxu1 %v4565_v42 }
0x1345   :  { %4314 = vmatprep.subr.bf16.mxu1 %v5918_v2 }
0x1348   :  { %4315 = vmatpush3.bf16.msra.mxu1 %v4566_v46 }
0x134a   :  { %4305 = vmatmul.mubr.msk.bf16.vlgmr.msra.gmra.mrb[56].mxu0 %vm3326_vm10, %v3324_v34 }
0x134b   :  { %4324 = vmatprep.mubr.msk.bf16.mxu0 %vm4992_vm0, %v5918_v2  ;;  %4321 = vmatpush3.bf16.msra.mxu0 %v4567_v14 }
0x134c   :  { %4322 = vmatprep.subr.bf16.mxu0 %v5918_v2 }
0x134f   :  { %4323 = vmatpush3.bf16.msra.mxu0 %v4568_v35 }
0x140d   :  { %v3317_v29 = vpop.f32.mrb[68].mxu1 }
0x140e   :  { %v4300_v47 = vpop.f32.mrb[69].mxu1 }
0x140f   :  { %v3320_v60 = vpop.f32.mrb[70].mxu1 }
0x1410   :  { %v4301_v7 = vpop.f32.mrb[71].mxu1 }
0x1415   :  { %v3250_v8 = vpop.f32.mrb[52].mxu0 }
0x1416   :  { %v3318_v30 = vadd.f32 %v3317_v29, %v3250_v8  ;;  %v4288_v9 = vpop.f32.mrb[53].mxu0 }
0x1417   :  { %v3253_v32 = vpop.f32.mrb[54].mxu0 }
0x1418   :  { %v4289_v24 = vpop.f32.mrb[55].mxu0 }
0x141d   :  { %v3368_v33 = vpop.f32.mrb[56].mxu0 }
0x141e   :  { %v3374_v40 = vadd.f32 %v3368_v33, %v3318_v30  ;;  %v4306_v45 = vpop.f32.mrb[57].mxu0 }
0x141f   :  { %v3371_v10 = vpop.f32.mrb[58].mxu0 }
0x1420   :  { %v3382_v12 = vadd.f32 %v3718_v61, %v3374_v40  ;;  %v4307_v55 = vpop.f32.mrb[59].mxu0 }
0x1422   :  { %v3383_v17 = vmax.f32 %v3382_v12, 0.0 }
0x1424   :  { %v3384_v4 = vpack.c.bf16 %v3383_v17, %v3383_v17 }
0x1426   :  { %4317 = vmatmul.mubr.msk.bf16.vlgmr.msra.gmra.mrb[72].mxu1 %vm3212_vm8, %v3384_v4 }
0x14f9   :  { %v3461_v18 = vpop.f32.mrb[72].mxu1 }
0x14fa   :  { %v3462_v43 = vadd.f32 %v3719_v53, %v3461_v18  ;;  %v4318_v37 = vpop.f32.mrb[73].mxu1 }
0x14fb   :  { %v3464_v36 = vpop.f32.mrb[74].mxu1 }
0x14fc   :  { %v3467_v20 = vmax.f32 %v3462_v43, 0.0  ;;  %v4319_v11 = vpop.f32.mrb[75].mxu1 }
0x14fe   :  { %v3468_v3 = vpack.c.bf16 %v3467_v20, %v3467_v20 }
0x1500   :  { %4325 = vmatmul.mubr.msk.bf16.vlgmr.msra.gmra.mrb[60].mxu0 %vm929_vm7, %v3468_v3 }
0x15d3   :  { %v3529_v5 = vpop.f32.mrb[60].mxu0 }
0x15d4   :  { %v3530_v54 = vadd.f32 %v3725_v48, %v3529_v5  ;;  %v4326_v19 = vpop.f32.mrb[61].mxu0 }
0x15d5   :  { %v3532_v56 = vpop.f32.mrb[62].mxu0 }
0x15d6   :  { %3536 = vst.msk [vmem:[%s5146_s21] sm:$0x3] %vm3535_vm11, %v3530_v54  ;;  %v4327_v2 = vpop.f32.mrb[63].mxu0 }
0x15d7   :  { %3541 = vsyncpa [#allocation4], 1 }
0x15d8   :  { %3542 = vsyncpa [#allocation6], 1 }
0x15d9   :  { %3543 = vsyncpa [#allocation9], 1 }
0x15da   :  { %3544 = vsyncpa [#allocation12], 1 }
0x15db   :  { %3545 = vsyncpa [#allocation15], 1 }
0x15dc   :  { %3546 = vsyncpa [#allocation18], 1 }
0x15dd   :  { %3547 = vsyncpa [#allocation21], 1 }
0x15de   :  { %3548 = vsyncpa [#allocation24], 1 }

</bundles_post_ra>
